<compile_context>
chip_gen: v5e
topology: v5e:2x2
jax: 0.10.0
libtpu: 0.0.40
codegen_flags: <defaults>
</compile_context>

<pallas_src>
import math
from functools import partial

import numpy as np
import jax
import jax.numpy as jnp
from jax.experimental import pallas as pl
from jax.experimental.pallas import tpu as pltpu


def _fcos_fused_kernel(num_layers, num_classes, out_rows,
                       x_ref, ml_ref, mr_ref, scl_ref,
                       wc_ref, bc_ref, gc_ref, hc_ref,      # cls tower
                       wb_ref, bb_ref, gb_ref, hb_ref,      # bbox tower
                       wcl_ref, bcl_ref,                    # cls_logits
                       wbp_ref, bbp_ref,                    # bbox_pred
                       wma_ref, wmb_ref, bm_ref, gm_ref, hm_ref,  # mix_fc
                       wi1_ref, bi1_ref, gi1_ref, hi1_ref,  # iou conv1 + BN
                       wi2_ref, bi2_ref,                    # iou conv2 (k=1)
                       out_ref):
    Lp = x_ref.shape[-1]
    # boundary masks hoisted once per invocation (shared by all 7 convs)
    mask_l = ml_ref[...]   # (1, Lp): 0 at each segment start
    mask_r = mr_ref[...]   # (1, Lp): 0 at each segment end

    def conv3(x, w, b):
        # x: (Cin, Lp); w: (Cout, 3*Cin) stacked taps [t-1 | t | t+1]; b: (Cout,1)
        x_m1 = pltpu.roll(x, shift=1, axis=1) * mask_l        # x[t-1], zero-padded
        x_p1 = pltpu.roll(x, shift=Lp - 1, axis=1) * mask_r   # x[t+1], zero-padded
        xs = jnp.concatenate([x_m1, x, x_p1], axis=0)          # (3*Cin, Lp)
        return jnp.dot(w, xs, preferred_element_type=jnp.float32) + b

    x = x_ref[...]                                             # (C, Lp)
    cls_t = x
    box_t = x
    for layer in range(num_layers):
        cls_t = jnp.maximum(
            conv3(cls_t, wc_ref[layer], bc_ref[layer]) * gc_ref[layer]
            + hc_ref[layer], 0.0)
        box_t = jnp.maximum(
            conv3(box_t, wb_ref[layer], bb_ref[layer]) * gb_ref[layer]
            + hb_ref[layer], 0.0)

    # classification logits: Conv1d(C -> K, k=3)
    logits = conv3(cls_t, wcl_ref[...], bcl_ref[...])          # (K, Lp)

    # bbox regression: exp(scale * Conv1d(C -> 2, k=3)); scale is per-lane
    bbox = jnp.exp(conv3(box_t, wbp_ref[...], bbp_ref[...]) * scl_ref[...])

    # mix_fc: Conv1d(2C -> C, k=1) + BN + ReLU without materializing the concat
    mix = jnp.maximum(
        (jnp.dot(wma_ref[...], cls_t, preferred_element_type=jnp.float32)
         + jnp.dot(wmb_ref[...], box_t, preferred_element_type=jnp.float32)
         + bm_ref[...]) * gm_ref[...] + hm_ref[...], 0.0)

    # iou_scores: Conv1d(C -> C//2, k=3) + BN + ReLU, then Conv1d(C//2 -> 1, k=1)
    hid = jnp.maximum(
        conv3(mix, wi1_ref[...], bi1_ref[...]) * gi1_ref[...] + hi1_ref[...], 0.0)
    iou = jnp.dot(wi2_ref[...], hid,
                  preferred_element_type=jnp.float32) + bi2_ref[...]   # (1, Lp)

    # pack all outputs into one sublane-aligned tile -> single unmasked store
    pieces = [logits, bbox, iou]
    pad_rows = out_rows - (num_classes + 3)
    if pad_rows > 0:
        pieces.append(jnp.zeros((pad_rows, Lp), jnp.float32))
    out_ref[...] = jnp.concatenate(pieces, axis=0)


def fcos_head_forward(features, params, scales, is_second_stage=False):
    """Mirror of FCOSHead.forward: returns (logits, bbox_reg, iou_scores) lists.

    features: list of (N, C, T_l) float32 arrays (one per pyramid level).
    """
    del is_second_stage  # only toggles .detach(); no forward-value effect
    N, C, _ = features[0].shape
    K = params["cls_logits_w"].shape[0]
    Ll = params["cls_tower_w"].shape[0]
    Ts = [int(f.shape[2]) for f in features]

    # ---- build lane-dense slab: (C, N * sum(T)) with per-sample segments ----
    segs, seg_lens, scale_vals = [], [], []
    for f, sc in zip(features, scales):
        T = int(f.shape[2])
        segs.append(jnp.transpose(f, (1, 0, 2)).reshape(C, N * T))
        seg_lens.extend([T] * N)
        scale_vals.extend([sc] * N)
    slab = jnp.concatenate(segs, axis=1)
    L_tot = slab.shape[1]
    Lp = ((L_tot + 127) // 128) * 128
    slab = jnp.pad(slab, ((0, 0), (0, Lp - L_tot)))

    # boundary masks (hoisted out of the kernel's conv calls)
    mask_l = np.ones((1, Lp), np.float32)
    mask_r = np.ones((1, Lp), np.float32)
    off = 0
    for T in seg_lens:
        mask_l[0, off] = 0.0
        mask_r[0, off + T - 1] = 0.0
        off += T
    mask_l[0, L_tot:] = 0.0
    mask_r[0, L_tot:] = 0.0
    mask_l = jnp.asarray(mask_l)
    mask_r = jnp.asarray(mask_r)

    # per-lane Scale row (one Scale per pyramid level)
    scale_segs = [jnp.full((1, T), sc, jnp.float32)
                  for T, sc in zip(seg_lens, scale_vals)]
    if Lp > L_tot:
        scale_segs.append(jnp.zeros((1, Lp - L_tot), jnp.float32))
    scale_row = jnp.concatenate(scale_segs, axis=1)

    out_rows = ((K + 3 + 7) // 8) * 8

    inputs = [
        slab, mask_l, mask_r, scale_row,
        params["cls_tower_w"], params["cls_tower_b"],
        params["cls_tower_s"], params["cls_tower_t"],
        params["bbox_tower_w"], params["bbox_tower_b"],
        params["bbox_tower_s"], params["bbox_tower_t"],
        params["cls_logits_w"], params["cls_logits_b"],
        params["bbox_pred_w"], params["bbox_pred_b"],
        params["mix_w_cls"], params["mix_w_box"],
        params["mix_b"], params["mix_s"], params["mix_t"],
        params["iou1_w"], params["iou1_b"], params["iou1_s"], params["iou1_t"],
        params["iou2_w"], params["iou2_b"],
    ]

    def full_spec(a):
        nd = a.ndim
        return pl.BlockSpec(a.shape, lambda i, _nd=nd: (0,) * _nd)

    out_slab = pl.pallas_call(
        partial(_fcos_fused_kernel, Ll, K, out_rows),
        grid=(1,),
        in_specs=[full_spec(a) for a in inputs],
        out_specs=pl.BlockSpec((out_rows, Lp), lambda i: (0, 0)),
        out_shape=jax.ShapeDtypeStruct((out_rows, Lp), jnp.float32),
        compiler_params=pltpu.CompilerParams(
            dimension_semantics=("arbitrary",)),
    )(*inputs)

    logits_rows = out_slab[0:K]
    bbox_rows = out_slab[K:K + 2]
    iou_rows = out_slab[K + 2:K + 3]

    # ---- split the fused slab back into per-level (N, c, T) outputs ----
    logits, bbox_reg, iou_scores = [], [], []
    off = 0
    for T in Ts:
        seg_len = N * T

        def unpack(rows, c, _off=off, _T=T):
            seg = rows[:, _off:_off + N * _T]
            return jnp.transpose(seg.reshape(c, N, _T), (1, 0, 2))

        logits.append(unpack(logits_rows, K))
        bbox_reg.append(unpack(bbox_rows, 2))
        iou_scores.append(unpack(iou_rows, 1))
        off += seg_len
    return logits, bbox_reg, iou_scores


def init_params(key, in_channels, fcos_num_class, fcos_conv_layers,
                fcos_prior_prob):
    C = in_channels
    K = fcos_num_class - 1
    Ch = C // 2
    Ll = fcos_conv_layers
    eps = 1e-5
    # folded eval-mode BatchNorm: gamma=1, beta=0, mean=0, var=1
    bn_s = 1.0 / math.sqrt(1.0 + eps)
    bias_value = -math.log((1 - fcos_prior_prob) / fcos_prior_prob)

    keys = iter(jax.random.split(key, 2 * Ll + 5))

    def conv_w3_stacked(k, cout, cin):
        # torch layout (cout, cin, 3): tap 0 -> x[t-1], 1 -> x[t], 2 -> x[t+1]
        w = 0.01 * jax.random.normal(k, (cout, cin, 3), jnp.float32)
        return jnp.concatenate([w[:, :, 0], w[:, :, 1], w[:, :, 2]], axis=1)

    def conv_w1(k, cout, cin):
        w = 0.01 * jax.random.normal(k, (cout, cin, 1), jnp.float32)
        return w[:, :, 0]

    zeros_LC1 = jnp.zeros((Ll, C, 1), jnp.float32)
    s_LC1 = jnp.full((Ll, C, 1), bn_s, jnp.float32)

    mix_w = conv_w1(next(keys), C, 2 * C)   # torch concat order: [cls | box]

    params = dict(
        cls_tower_w=jnp.stack([conv_w3_stacked(next(keys), C, C)
                               for _ in range(Ll)]),
        cls_tower_b=zeros_LC1, cls_tower_s=s_LC1, cls_tower_t=zeros_LC1,
        bbox_tower_w=jnp.stack([conv_w3_stacked(next(keys), C, C)
                                for _ in range(Ll)]),
        bbox_tower_b=zeros_LC1, bbox_tower_s=s_LC1, bbox_tower_t=zeros_LC1,
        cls_logits_w=conv_w3_stacked(next(keys), K, C),
        cls_logits_b=jnp.full((K, 1), bias_value, jnp.float32),
        bbox_pred_w=conv_w3_stacked(next(keys), 2, C),
        bbox_pred_b=jnp.zeros((2, 1), jnp.float32),
        mix_w_cls=mix_w[:, :C],
        mix_w_box=mix_w[:, C:],
        mix_b=jnp.zeros((C, 1), jnp.float32),
        mix_s=jnp.full((C, 1), bn_s, jnp.float32),
        mix_t=jnp.zeros((C, 1), jnp.float32),
        iou1_w=conv_w3_stacked(next(keys), Ch, C),
        iou1_b=jnp.zeros((Ch, 1), jnp.float32),
        iou1_s=jnp.full((Ch, 1), bn_s, jnp.float32),
        iou1_t=jnp.zeros((Ch, 1), jnp.float32),
        iou2_w=conv_w1(next(keys), 1, Ch),
        iou2_b=jnp.zeros((1, 1), jnp.float32),
    )
    return params


if __name__ == "__main__":
    in_channels = 32
    fcos_num_class = 4        # -> num_classes = 3
    fcos_conv_layers = 2
    fcos_prior_prob = 0.01
    is_second_stage = False

    key = jax.random.PRNGKey(0)
    pkey, xkey = jax.random.split(key)
    params = init_params(pkey, in_channels, fcos_num_class,
                         fcos_conv_layers, fcos_prior_prob)

    # three pyramid levels with decreasing temporal lengths
    N = 2
    Ts = [32, 16, 8]
    xkeys = jax.random.split(xkey, len(Ts))
    features = [jax.random.normal(k, (N, in_channels, t), jnp.float32)
                for k, t in zip(xkeys, Ts)]
    scales = [1.0, 1.0, 1.0]  # Scale(init_value=1.0) per level

    logits, bbox_reg, iou_scores = fcos_head_forward(
        features, params, scales, is_second_stage)

    jax.block_until_ready((logits, bbox_reg, iou_scores))

    # basic shape sanity checks mirroring the PyTorch module
    for lo, bb, io, t in zip(logits, bbox_reg, iou_scores, Ts):
        assert lo.shape == (N, fcos_num_class - 1, t)
        assert bb.shape == (N, 2, t)
        assert io.shape == (N, 1, t)
        assert bool(jnp.all(jnp.isfinite(lo)))
        assert bool(jnp.all(jnp.isfinite(bb)))
        assert bool(jnp.all(jnp.isfinite(io)))

    print("KERNEL_OK")
</pallas_src>

<mosaic_0001>
module attributes {stable_mosaic.version = 11 : i64} {
  func.func @_fcos_fused_kernel(%arg0: i32, %arg1: memref<32x128xf32, #tpu.memory_space<vmem>>, %arg2: memref<1x128xf32, #tpu.memory_space<vmem>>, %arg3: memref<1x128xf32, #tpu.memory_space<vmem>>, %arg4: memref<1x128xf32, #tpu.memory_space<vmem>>, %arg5: memref<2x32x96xf32, #tpu.memory_space<vmem>>, %arg6: memref<2x32x1xf32, #tpu.memory_space<vmem>>, %arg7: memref<2x32x1xf32, #tpu.memory_space<vmem>>, %arg8: memref<2x32x1xf32, #tpu.memory_space<vmem>>, %arg9: memref<2x32x96xf32, #tpu.memory_space<vmem>>, %arg10: memref<2x32x1xf32, #tpu.memory_space<vmem>>, %arg11: memref<2x32x1xf32, #tpu.memory_space<vmem>>, %arg12: memref<2x32x1xf32, #tpu.memory_space<vmem>>, %arg13: memref<3x96xf32, #tpu.memory_space<vmem>>, %arg14: memref<3x1xf32, #tpu.memory_space<vmem>>, %arg15: memref<2x96xf32, #tpu.memory_space<vmem>>, %arg16: memref<2x1xf32, #tpu.memory_space<vmem>>, %arg17: memref<32x32xf32, #tpu.memory_space<vmem>>, %arg18: memref<32x32xf32, #tpu.memory_space<vmem>>, %arg19: memref<32x1xf32, #tpu.memory_space<vmem>>, %arg20: memref<32x1xf32, #tpu.memory_space<vmem>>, %arg21: memref<32x1xf32, #tpu.memory_space<vmem>>, %arg22: memref<16x96xf32, #tpu.memory_space<vmem>>, %arg23: memref<16x1xf32, #tpu.memory_space<vmem>>, %arg24: memref<16x1xf32, #tpu.memory_space<vmem>>, %arg25: memref<16x1xf32, #tpu.memory_space<vmem>>, %arg26: memref<1x16xf32, #tpu.memory_space<vmem>>, %arg27: memref<1x1xf32, #tpu.memory_space<vmem>>, %arg28: memref<8x128xf32, #tpu.memory_space<vmem>>) attributes {dimension_semantics = [#tpu.dimension_semantics<arbitrary>], iteration_bounds = array<i64: 1>, scalar_prefetch = 0 : i64, scratch_operands = 0 : i64, tpu.core_type = #tpu.core_type<tc>, window_params = [{pipeline_mode = #tpu.pipeline_mode<synchronous>, transform_indices = @transform_0, window_bounds = array<i64: 32, 128>}, {pipeline_mode = #tpu.pipeline_mode<synchronous>, transform_indices = @transform_1, window_bounds = array<i64: 1, 128>}, {pipeline_mode = #tpu.pipeline_mode<synchronous>, transform_indices = @transform_2, window_bounds = array<i64: 1, 128>}, {pipeline_mode = #tpu.pipeline_mode<synchronous>, transform_indices = @transform_3, window_bounds = array<i64: 1, 128>}, {pipeline_mode = #tpu.pipeline_mode<synchronous>, transform_indices = @transform_4, window_bounds = array<i64: 2, 32, 96>}, {pipeline_mode = #tpu.pipeline_mode<synchronous>, transform_indices = @transform_5, window_bounds = array<i64: 2, 32, 1>}, {pipeline_mode = #tpu.pipeline_mode<synchronous>, transform_indices = @transform_6, window_bounds = array<i64: 2, 32, 1>}, {pipeline_mode = #tpu.pipeline_mode<synchronous>, transform_indices = @transform_7, window_bounds = array<i64: 2, 32, 1>}, {pipeline_mode = #tpu.pipeline_mode<synchronous>, transform_indices = @transform_8, window_bounds = array<i64: 2, 32, 96>}, {pipeline_mode = #tpu.pipeline_mode<synchronous>, transform_indices = @transform_9, window_bounds = array<i64: 2, 32, 1>}, {pipeline_mode = #tpu.pipeline_mode<synchronous>, transform_indices = @transform_10, window_bounds = array<i64: 2, 32, 1>}, {pipeline_mode = #tpu.pipeline_mode<synchronous>, transform_indices = @transform_11, window_bounds = array<i64: 2, 32, 1>}, {pipeline_mode = #tpu.pipeline_mode<synchronous>, transform_indices = @transform_12, window_bounds = array<i64: 3, 96>}, {pipeline_mode = #tpu.pipeline_mode<synchronous>, transform_indices = @transform_13, window_bounds = array<i64: 3, 1>}, {pipeline_mode = #tpu.pipeline_mode<synchronous>, transform_indices = @transform_14, window_bounds = array<i64: 2, 96>}, {pipeline_mode = #tpu.pipeline_mode<synchronous>, transform_indices = @transform_15, window_bounds = array<i64: 2, 1>}, {pipeline_mode = #tpu.pipeline_mode<synchronous>, transform_indices = @transform_16, window_bounds = array<i64: 32, 32>}, {pipeline_mode = #tpu.pipeline_mode<synchronous>, transform_indices = @transform_17, window_bounds = array<i64: 32, 32>}, {pipeline_mode = #tpu.pipeline_mode<synchronous>, transform_indices = @transform_18, window_bounds = array<i64: 32, 1>}, {pipeline_mode = #tpu.pipeline_mode<synchronous>, transform_indices = @transform_19, window_bounds = array<i64: 32, 1>}, {pipeline_mode = #tpu.pipeline_mode<synchronous>, transform_indices = @transform_20, window_bounds = array<i64: 32, 1>}, {pipeline_mode = #tpu.pipeline_mode<synchronous>, transform_indices = @transform_21, window_bounds = array<i64: 16, 96>}, {pipeline_mode = #tpu.pipeline_mode<synchronous>, transform_indices = @transform_22, window_bounds = array<i64: 16, 1>}, {pipeline_mode = #tpu.pipeline_mode<synchronous>, transform_indices = @transform_23, window_bounds = array<i64: 16, 1>}, {pipeline_mode = #tpu.pipeline_mode<synchronous>, transform_indices = @transform_24, window_bounds = array<i64: 16, 1>}, {pipeline_mode = #tpu.pipeline_mode<synchronous>, transform_indices = @transform_25, window_bounds = array<i64: 1, 16>}, {pipeline_mode = #tpu.pipeline_mode<synchronous>, transform_indices = @transform_26, window_bounds = array<i64: 1, 1>}, {pipeline_mode = #tpu.pipeline_mode<synchronous>, transform_indices = @transform_27, window_bounds = array<i64: 8, 128>}]} {
    %c0 = arith.constant 0 : index
    %c0_0 = arith.constant 0 : index
    %0 = vector.load %arg2[%c0, %c0_0] : memref<1x128xf32, #tpu.memory_space<vmem>>, vector<1x128xf32>
    %c0_1 = arith.constant 0 : index
    %c0_2 = arith.constant 0 : index
    %1 = vector.load %arg3[%c0_1, %c0_2] : memref<1x128xf32, #tpu.memory_space<vmem>>, vector<1x128xf32>
    %c0_3 = arith.constant 0 : index
    %c0_4 = arith.constant 0 : index
    %2 = vector.load %arg1[%c0_3, %c0_4] : memref<32x128xf32, #tpu.memory_space<vmem>>, vector<32x128xf32>
    %c0_5 = arith.constant 0 : index
    %c0_6 = arith.constant 0 : index
    %c0_7 = arith.constant 0 : index
    %3 = vector.load %arg5[%c0_5, %c0_6, %c0_7] : memref<2x32x96xf32, #tpu.memory_space<vmem>>, vector<1x32x96xf32>
    %4 = vector.shape_cast %3 : vector<1x32x96xf32> to vector<32x96xf32>
    %c0_8 = arith.constant 0 : index
    %c0_9 = arith.constant 0 : index
    %c0_10 = arith.constant 0 : index
    %5 = vector.load %arg6[%c0_8, %c0_9, %c0_10] : memref<2x32x1xf32, #tpu.memory_space<vmem>>, vector<1x32x1xf32>
    %6 = vector.shape_cast %5 : vector<1x32x1xf32> to vector<32x1xf32>
    %c1_i32 = arith.constant 1 : i32
    %7 = tpu.dynamic_rotate %2 by %c1_i32 dim 1 : vector<32x128xf32>, i32 -> vector<32x128xf32>
    %8 = vector.broadcast %0 : vector<1x128xf32> to vector<32x128xf32>
    %9 = arith.mulf %7, %8 : vector<32x128xf32>
    %c127_i32 = arith.constant 127 : i32
    %10 = tpu.dynamic_rotate %2 by %c127_i32 dim 1 : vector<32x128xf32>, i32 -> vector<32x128xf32>
    %11 = vector.broadcast %1 : vector<1x128xf32> to vector<32x128xf32>
    %12 = arith.mulf %10, %11 : vector<32x128xf32>
    %13 = tpu.concatenate %9, %2, %12 in 0 : vector<32x128xf32>, vector<32x128xf32>, vector<32x128xf32> -> vector<96x128xf32>
    %cst = arith.constant dense<0.000000e+00> : vector<32x128xf32>
    %14 = tpu.matmul %4, %13, %cst {dimension_numbers = #tpu.dot_dimension_numbers<[1], [0], [0], [1], [0, 0, 1, 1], [], []>} : vector<32x96xf32>, vector<96x128xf32>, vector<32x128xf32> -> vector<32x128xf32>
    %15 = vector.broadcast %6 : vector<32x1xf32> to vector<32x128xf32>
    %16 = arith.addf %14, %15 : vector<32x128xf32>
    %c0_11 = arith.constant 0 : index
    %c0_12 = arith.constant 0 : index
    %c0_13 = arith.constant 0 : index
    %17 = vector.load %arg7[%c0_11, %c0_12, %c0_13] : memref<2x32x1xf32, #tpu.memory_space<vmem>>, vector<1x32x1xf32>
    %18 = vector.shape_cast %17 : vector<1x32x1xf32> to vector<32x1xf32>
    %19 = vector.broadcast %18 : vector<32x1xf32> to vector<32x128xf32>
    %20 = arith.mulf %16, %19 : vector<32x128xf32>
    %c0_14 = arith.constant 0 : index
    %c0_15 = arith.constant 0 : index
    %c0_16 = arith.constant 0 : index
    %21 = vector.load %arg8[%c0_14, %c0_15, %c0_16] : memref<2x32x1xf32, #tpu.memory_space<vmem>>, vector<1x32x1xf32>
    %22 = vector.shape_cast %21 : vector<1x32x1xf32> to vector<32x1xf32>
    %23 = vector.broadcast %22 : vector<32x1xf32> to vector<32x128xf32>
    %24 = arith.addf %20, %23 : vector<32x128xf32>
    %cst_17 = arith.constant 0.000000e+00 : f32
    %25 = vector.broadcast %cst_17 : f32 to vector<32x128xf32>
    %26 = arith.maximumf %24, %25 : vector<32x128xf32>
    %c0_18 = arith.constant 0 : index
    %c0_19 = arith.constant 0 : index
    %c0_20 = arith.constant 0 : index
    %27 = vector.load %arg9[%c0_18, %c0_19, %c0_20] : memref<2x32x96xf32, #tpu.memory_space<vmem>>, vector<1x32x96xf32>
    %28 = vector.shape_cast %27 : vector<1x32x96xf32> to vector<32x96xf32>
    %c0_21 = arith.constant 0 : index
    %c0_22 = arith.constant 0 : index
    %c0_23 = arith.constant 0 : index
    %29 = vector.load %arg10[%c0_21, %c0_22, %c0_23] : memref<2x32x1xf32, #tpu.memory_space<vmem>>, vector<1x32x1xf32>
    %30 = vector.shape_cast %29 : vector<1x32x1xf32> to vector<32x1xf32>
    %c1_i32_24 = arith.constant 1 : i32
    %31 = tpu.dynamic_rotate %2 by %c1_i32_24 dim 1 : vector<32x128xf32>, i32 -> vector<32x128xf32>
    %32 = vector.broadcast %0 : vector<1x128xf32> to vector<32x128xf32>
    %33 = arith.mulf %31, %32 : vector<32x128xf32>
    %c127_i32_25 = arith.constant 127 : i32
    %34 = tpu.dynamic_rotate %2 by %c127_i32_25 dim 1 : vector<32x128xf32>, i32 -> vector<32x128xf32>
    %35 = vector.broadcast %1 : vector<1x128xf32> to vector<32x128xf32>
    %36 = arith.mulf %34, %35 : vector<32x128xf32>
    %37 = tpu.concatenate %33, %2, %36 in 0 : vector<32x128xf32>, vector<32x128xf32>, vector<32x128xf32> -> vector<96x128xf32>
    %cst_26 = arith.constant dense<0.000000e+00> : vector<32x128xf32>
    %38 = tpu.matmul %28, %37, %cst_26 {dimension_numbers = #tpu.dot_dimension_numbers<[1], [0], [0], [1], [0, 0, 1, 1], [], []>} : vector<32x96xf32>, vector<96x128xf32>, vector<32x128xf32> -> vector<32x128xf32>
    %39 = vector.broadcast %30 : vector<32x1xf32> to vector<32x128xf32>
    %40 = arith.addf %38, %39 : vector<32x128xf32>
    %c0_27 = arith.constant 0 : index
    %c0_28 = arith.constant 0 : index
    %c0_29 = arith.constant 0 : index
    %41 = vector.load %arg11[%c0_27, %c0_28, %c0_29] : memref<2x32x1xf32, #tpu.memory_space<vmem>>, vector<1x32x1xf32>
    %42 = vector.shape_cast %41 : vector<1x32x1xf32> to vector<32x1xf32>
    %43 = vector.broadcast %42 : vector<32x1xf32> to vector<32x128xf32>
    %44 = arith.mulf %40, %43 : vector<32x128xf32>
    %c0_30 = arith.constant 0 : index
    %c0_31 = arith.constant 0 : index
    %c0_32 = arith.constant 0 : index
    %45 = vector.load %arg12[%c0_30, %c0_31, %c0_32] : memref<2x32x1xf32, #tpu.memory_space<vmem>>, vector<1x32x1xf32>
    %46 = vector.shape_cast %45 : vector<1x32x1xf32> to vector<32x1xf32>
    %47 = vector.broadcast %46 : vector<32x1xf32> to vector<32x128xf32>
    %48 = arith.addf %44, %47 : vector<32x128xf32>
    %cst_33 = arith.constant 0.000000e+00 : f32
    %49 = vector.broadcast %cst_33 : f32 to vector<32x128xf32>
    %50 = arith.maximumf %48, %49 : vector<32x128xf32>
    %c1 = arith.constant 1 : index
    %c0_34 = arith.constant 0 : index
    %c0_35 = arith.constant 0 : index
    %51 = vector.load %arg5[%c1, %c0_34, %c0_35] : memref<2x32x96xf32, #tpu.memory_space<vmem>>, vector<1x32x96xf32>
    %52 = vector.shape_cast %51 : vector<1x32x96xf32> to vector<32x96xf32>
    %c1_36 = arith.constant 1 : index
    %c0_37 = arith.constant 0 : index
    %c0_38 = arith.constant 0 : index
    %53 = vector.load %arg6[%c1_36, %c0_37, %c0_38] : memref<2x32x1xf32, #tpu.memory_space<vmem>>, vector<1x32x1xf32>
    %54 = vector.shape_cast %53 : vector<1x32x1xf32> to vector<32x1xf32>
    %c1_i32_39 = arith.constant 1 : i32
    %55 = tpu.dynamic_rotate %26 by %c1_i32_39 dim 1 : vector<32x128xf32>, i32 -> vector<32x128xf32>
    %56 = vector.broadcast %0 : vector<1x128xf32> to vector<32x128xf32>
    %57 = arith.mulf %55, %56 : vector<32x128xf32>
    %c127_i32_40 = arith.constant 127 : i32
    %58 = tpu.dynamic_rotate %26 by %c127_i32_40 dim 1 : vector<32x128xf32>, i32 -> vector<32x128xf32>
    %59 = vector.broadcast %1 : vector<1x128xf32> to vector<32x128xf32>
    %60 = arith.mulf %58, %59 : vector<32x128xf32>
    %61 = tpu.concatenate %57, %26, %60 in 0 : vector<32x128xf32>, vector<32x128xf32>, vector<32x128xf32> -> vector<96x128xf32>
    %cst_41 = arith.constant dense<0.000000e+00> : vector<32x128xf32>
    %62 = tpu.matmul %52, %61, %cst_41 {dimension_numbers = #tpu.dot_dimension_numbers<[1], [0], [0], [1], [0, 0, 1, 1], [], []>} : vector<32x96xf32>, vector<96x128xf32>, vector<32x128xf32> -> vector<32x128xf32>
    %63 = vector.broadcast %54 : vector<32x1xf32> to vector<32x128xf32>
    %64 = arith.addf %62, %63 : vector<32x128xf32>
    %c1_42 = arith.constant 1 : index
    %c0_43 = arith.constant 0 : index
    %c0_44 = arith.constant 0 : index
    %65 = vector.load %arg7[%c1_42, %c0_43, %c0_44] : memref<2x32x1xf32, #tpu.memory_space<vmem>>, vector<1x32x1xf32>
    %66 = vector.shape_cast %65 : vector<1x32x1xf32> to vector<32x1xf32>
    %67 = vector.broadcast %66 : vector<32x1xf32> to vector<32x128xf32>
    %68 = arith.mulf %64, %67 : vector<32x128xf32>
    %c1_45 = arith.constant 1 : index
    %c0_46 = arith.constant 0 : index
    %c0_47 = arith.constant 0 : index
    %69 = vector.load %arg8[%c1_45, %c0_46, %c0_47] : memref<2x32x1xf32, #tpu.memory_space<vmem>>, vector<1x32x1xf32>
    %70 = vector.shape_cast %69 : vector<1x32x1xf32> to vector<32x1xf32>
    %71 = vector.broadcast %70 : vector<32x1xf32> to vector<32x128xf32>
    %72 = arith.addf %68, %71 : vector<32x128xf32>
    %cst_48 = arith.constant 0.000000e+00 : f32
    %73 = vector.broadcast %cst_48 : f32 to vector<32x128xf32>
    %74 = arith.maximumf %72, %73 : vector<32x128xf32>
    %c1_49 = arith.constant 1 : index
    %c0_50 = arith.constant 0 : index
    %c0_51 = arith.constant 0 : index
    %75 = vector.load %arg9[%c1_49, %c0_50, %c0_51] : memref<2x32x96xf32, #tpu.memory_space<vmem>>, vector<1x32x96xf32>
    %76 = vector.shape_cast %75 : vector<1x32x96xf32> to vector<32x96xf32>
    %c1_52 = arith.constant 1 : index
    %c0_53 = arith.constant 0 : index
    %c0_54 = arith.constant 0 : index
    %77 = vector.load %arg10[%c1_52, %c0_53, %c0_54] : memref<2x32x1xf32, #tpu.memory_space<vmem>>, vector<1x32x1xf32>
    %78 = vector.shape_cast %77 : vector<1x32x1xf32> to vector<32x1xf32>
    %c1_i32_55 = arith.constant 1 : i32
    %79 = tpu.dynamic_rotate %50 by %c1_i32_55 dim 1 : vector<32x128xf32>, i32 -> vector<32x128xf32>
    %80 = vector.broadcast %0 : vector<1x128xf32> to vector<32x128xf32>
    %81 = arith.mulf %79, %80 : vector<32x128xf32>
    %c127_i32_56 = arith.constant 127 : i32
    %82 = tpu.dynamic_rotate %50 by %c127_i32_56 dim 1 : vector<32x128xf32>, i32 -> vector<32x128xf32>
    %83 = vector.broadcast %1 : vector<1x128xf32> to vector<32x128xf32>
    %84 = arith.mulf %82, %83 : vector<32x128xf32>
    %85 = tpu.concatenate %81, %50, %84 in 0 : vector<32x128xf32>, vector<32x128xf32>, vector<32x128xf32> -> vector<96x128xf32>
    %cst_57 = arith.constant dense<0.000000e+00> : vector<32x128xf32>
    %86 = tpu.matmul %76, %85, %cst_57 {dimension_numbers = #tpu.dot_dimension_numbers<[1], [0], [0], [1], [0, 0, 1, 1], [], []>} : vector<32x96xf32>, vector<96x128xf32>, vector<32x128xf32> -> vector<32x128xf32>
    %87 = vector.broadcast %78 : vector<32x1xf32> to vector<32x128xf32>
    %88 = arith.addf %86, %87 : vector<32x128xf32>
    %c1_58 = arith.constant 1 : index
    %c0_59 = arith.constant 0 : index
    %c0_60 = arith.constant 0 : index
    %89 = vector.load %arg11[%c1_58, %c0_59, %c0_60] : memref<2x32x1xf32, #tpu.memory_space<vmem>>, vector<1x32x1xf32>
    %90 = vector.shape_cast %89 : vector<1x32x1xf32> to vector<32x1xf32>
    %91 = vector.broadcast %90 : vector<32x1xf32> to vector<32x128xf32>
    %92 = arith.mulf %88, %91 : vector<32x128xf32>
    %c1_61 = arith.constant 1 : index
    %c0_62 = arith.constant 0 : index
    %c0_63 = arith.constant 0 : index
    %93 = vector.load %arg12[%c1_61, %c0_62, %c0_63] : memref<2x32x1xf32, #tpu.memory_space<vmem>>, vector<1x32x1xf32>
    %94 = vector.shape_cast %93 : vector<1x32x1xf32> to vector<32x1xf32>
    %95 = vector.broadcast %94 : vector<32x1xf32> to vector<32x128xf32>
    %96 = arith.addf %92, %95 : vector<32x128xf32>
    %cst_64 = arith.constant 0.000000e+00 : f32
    %97 = vector.broadcast %cst_64 : f32 to vector<32x128xf32>
    %98 = arith.maximumf %96, %97 : vector<32x128xf32>
    %c0_65 = arith.constant 0 : index
    %c0_66 = arith.constant 0 : index
    %99 = vector.load %arg13[%c0_65, %c0_66] : memref<3x96xf32, #tpu.memory_space<vmem>>, vector<3x96xf32>
    %c0_67 = arith.constant 0 : index
    %c0_68 = arith.constant 0 : index
    %100 = vector.load %arg14[%c0_67, %c0_68] : memref<3x1xf32, #tpu.memory_space<vmem>>, vector<3x1xf32>
    %c1_i32_69 = arith.constant 1 : i32
    %101 = tpu.dynamic_rotate %74 by %c1_i32_69 dim 1 : vector<32x128xf32>, i32 -> vector<32x128xf32>
    %102 = vector.broadcast %0 : vector<1x128xf32> to vector<32x128xf32>
    %103 = arith.mulf %101, %102 : vector<32x128xf32>
    %c127_i32_70 = arith.constant 127 : i32
    %104 = tpu.dynamic_rotate %74 by %c127_i32_70 dim 1 : vector<32x128xf32>, i32 -> vector<32x128xf32>
    %105 = vector.broadcast %1 : vector<1x128xf32> to vector<32x128xf32>
    %106 = arith.mulf %104, %105 : vector<32x128xf32>
    %107 = tpu.concatenate %103, %74, %106 in 0 : vector<32x128xf32>, vector<32x128xf32>, vector<32x128xf32> -> vector<96x128xf32>
    %cst_71 = arith.constant dense<0.000000e+00> : vector<3x128xf32>
    %108 = tpu.matmul %99, %107, %cst_71 {dimension_numbers = #tpu.dot_dimension_numbers<[1], [0], [0], [1], [0, 0, 1, 1], [], []>} : vector<3x96xf32>, vector<96x128xf32>, vector<3x128xf32> -> vector<3x128xf32>
    %109 = vector.broadcast %100 : vector<3x1xf32> to vector<3x128xf32>
    %110 = arith.addf %108, %109 : vector<3x128xf32>
    %c0_72 = arith.constant 0 : index
    %c0_73 = arith.constant 0 : index
    %111 = vector.load %arg15[%c0_72, %c0_73] : memref<2x96xf32, #tpu.memory_space<vmem>>, vector<2x96xf32>
    %c0_74 = arith.constant 0 : index
    %c0_75 = arith.constant 0 : index
    %112 = vector.load %arg16[%c0_74, %c0_75] : memref<2x1xf32, #tpu.memory_space<vmem>>, vector<2x1xf32>
    %c1_i32_76 = arith.constant 1 : i32
    %113 = tpu.dynamic_rotate %98 by %c1_i32_76 dim 1 : vector<32x128xf32>, i32 -> vector<32x128xf32>
    %114 = vector.broadcast %0 : vector<1x128xf32> to vector<32x128xf32>
    %115 = arith.mulf %113, %114 : vector<32x128xf32>
    %c127_i32_77 = arith.constant 127 : i32
    %116 = tpu.dynamic_rotate %98 by %c127_i32_77 dim 1 : vector<32x128xf32>, i32 -> vector<32x128xf32>
    %117 = vector.broadcast %1 : vector<1x128xf32> to vector<32x128xf32>
    %118 = arith.mulf %116, %117 : vector<32x128xf32>
    %119 = tpu.concatenate %115, %98, %118 in 0 : vector<32x128xf32>, vector<32x128xf32>, vector<32x128xf32> -> vector<96x128xf32>
    %cst_78 = arith.constant dense<0.000000e+00> : vector<2x128xf32>
    %120 = tpu.matmul %111, %119, %cst_78 {dimension_numbers = #tpu.dot_dimension_numbers<[1], [0], [0], [1], [0, 0, 1, 1], [], []>} : vector<2x96xf32>, vector<96x128xf32>, vector<2x128xf32> -> vector<2x128xf32>
    %121 = vector.broadcast %112 : vector<2x1xf32> to vector<2x128xf32>
    %122 = arith.addf %120, %121 : vector<2x128xf32>
    %c0_79 = arith.constant 0 : index
    %c0_80 = arith.constant 0 : index
    %123 = vector.load %arg4[%c0_79, %c0_80] : memref<1x128xf32, #tpu.memory_space<vmem>>, vector<1x128xf32>
    %124 = vector.broadcast %123 : vector<1x128xf32> to vector<2x128xf32>
    %125 = arith.mulf %122, %124 : vector<2x128xf32>
    %126 = math.exp %125 : vector<2x128xf32>
    %c0_81 = arith.constant 0 : index
    %c0_82 = arith.constant 0 : index
    %127 = vector.load %arg17[%c0_81, %c0_82] : memref<32x32xf32, #tpu.memory_space<vmem>>, vector<32x32xf32>
    %cst_83 = arith.constant dense<0.000000e+00> : vector<32x128xf32>
    %128 = tpu.matmul %127, %74, %cst_83 {dimension_numbers = #tpu.dot_dimension_numbers<[1], [0], [0], [1], [0, 0, 1, 1], [], []>} : vector<32x32xf32>, vector<32x128xf32>, vector<32x128xf32> -> vector<32x128xf32>
    %c0_84 = arith.constant 0 : index
    %c0_85 = arith.constant 0 : index
    %129 = vector.load %arg18[%c0_84, %c0_85] : memref<32x32xf32, #tpu.memory_space<vmem>>, vector<32x32xf32>
    %cst_86 = arith.constant dense<0.000000e+00> : vector<32x128xf32>
    %130 = tpu.matmul %129, %98, %cst_86 {dimension_numbers = #tpu.dot_dimension_numbers<[1], [0], [0], [1], [0, 0, 1, 1], [], []>} : vector<32x32xf32>, vector<32x128xf32>, vector<32x128xf32> -> vector<32x128xf32>
    %131 = arith.addf %128, %130 : vector<32x128xf32>
    %c0_87 = arith.constant 0 : index
    %c0_88 = arith.constant 0 : index
    %132 = vector.load %arg19[%c0_87, %c0_88] : memref<32x1xf32, #tpu.memory_space<vmem>>, vector<32x1xf32>
    %133 = vector.broadcast %132 : vector<32x1xf32> to vector<32x128xf32>
    %134 = arith.addf %131, %133 : vector<32x128xf32>
    %c0_89 = arith.constant 0 : index
    %c0_90 = arith.constant 0 : index
    %135 = vector.load %arg20[%c0_89, %c0_90] : memref<32x1xf32, #tpu.memory_space<vmem>>, vector<32x1xf32>
    %136 = vector.broadcast %135 : vector<32x1xf32> to vector<32x128xf32>
    %137 = arith.mulf %134, %136 : vector<32x128xf32>
    %c0_91 = arith.constant 0 : index
    %c0_92 = arith.constant 0 : index
    %138 = vector.load %arg21[%c0_91, %c0_92] : memref<32x1xf32, #tpu.memory_space<vmem>>, vector<32x1xf32>
    %139 = vector.broadcast %138 : vector<32x1xf32> to vector<32x128xf32>
    %140 = arith.addf %137, %139 : vector<32x128xf32>
    %cst_93 = arith.constant 0.000000e+00 : f32
    %141 = vector.broadcast %cst_93 : f32 to vector<32x128xf32>
    %142 = arith.maximumf %140, %141 : vector<32x128xf32>
    %c0_94 = arith.constant 0 : index
    %c0_95 = arith.constant 0 : index
    %143 = vector.load %arg22[%c0_94, %c0_95] : memref<16x96xf32, #tpu.memory_space<vmem>>, vector<16x96xf32>
    %c0_96 = arith.constant 0 : index
    %c0_97 = arith.constant 0 : index
    %144 = vector.load %arg23[%c0_96, %c0_97] : memref<16x1xf32, #tpu.memory_space<vmem>>, vector<16x1xf32>
    %c1_i32_98 = arith.constant 1 : i32
    %145 = tpu.dynamic_rotate %142 by %c1_i32_98 dim 1 : vector<32x128xf32>, i32 -> vector<32x128xf32>
    %146 = vector.broadcast %0 : vector<1x128xf32> to vector<32x128xf32>
    %147 = arith.mulf %145, %146 : vector<32x128xf32>
    %c127_i32_99 = arith.constant 127 : i32
    %148 = tpu.dynamic_rotate %142 by %c127_i32_99 dim 1 : vector<32x128xf32>, i32 -> vector<32x128xf32>
    %149 = vector.broadcast %1 : vector<1x128xf32> to vector<32x128xf32>
    %150 = arith.mulf %148, %149 : vector<32x128xf32>
    %151 = tpu.concatenate %147, %142, %150 in 0 : vector<32x128xf32>, vector<32x128xf32>, vector<32x128xf32> -> vector<96x128xf32>
    %cst_100 = arith.constant dense<0.000000e+00> : vector<16x128xf32>
    %152 = tpu.matmul %143, %151, %cst_100 {dimension_numbers = #tpu.dot_dimension_numbers<[1], [0], [0], [1], [0, 0, 1, 1], [], []>} : vector<16x96xf32>, vector<96x128xf32>, vector<16x128xf32> -> vector<16x128xf32>
    %153 = vector.broadcast %144 : vector<16x1xf32> to vector<16x128xf32>
    %154 = arith.addf %152, %153 : vector<16x128xf32>
    %c0_101 = arith.constant 0 : index
    %c0_102 = arith.constant 0 : index
    %155 = vector.load %arg24[%c0_101, %c0_102] : memref<16x1xf32, #tpu.memory_space<vmem>>, vector<16x1xf32>
    %156 = vector.broadcast %155 : vector<16x1xf32> to vector<16x128xf32>
    %157 = arith.mulf %154, %156 : vector<16x128xf32>
    %c0_103 = arith.constant 0 : index
    %c0_104 = arith.constant 0 : index
    %158 = vector.load %arg25[%c0_103, %c0_104] : memref<16x1xf32, #tpu.memory_space<vmem>>, vector<16x1xf32>
    %159 = vector.broadcast %158 : vector<16x1xf32> to vector<16x128xf32>
    %160 = arith.addf %157, %159 : vector<16x128xf32>
    %cst_105 = arith.constant 0.000000e+00 : f32
    %161 = vector.broadcast %cst_105 : f32 to vector<16x128xf32>
    %162 = arith.maximumf %160, %161 : vector<16x128xf32>
    %c0_106 = arith.constant 0 : index
    %c0_107 = arith.constant 0 : index
    %163 = vector.load %arg26[%c0_106, %c0_107] : memref<1x16xf32, #tpu.memory_space<vmem>>, vector<1x16xf32>
    %cst_108 = arith.constant dense<0.000000e+00> : vector<1x128xf32>
    %164 = tpu.matmul %163, %162, %cst_108 {dimension_numbers = #tpu.dot_dimension_numbers<[1], [0], [0], [1], [0, 0, 1, 1], [], []>} : vector<1x16xf32>, vector<16x128xf32>, vector<1x128xf32> -> vector<1x128xf32>
    %c0_109 = arith.constant 0 : index
    %c0_110 = arith.constant 0 : index
    %165 = vector.load %arg27[%c0_109, %c0_110] : memref<1x1xf32, #tpu.memory_space<vmem>>, vector<1x1xf32>
    %166 = vector.broadcast %165 : vector<1x1xf32> to vector<1x128xf32>
    %167 = arith.addf %164, %166 : vector<1x128xf32>
    %cst_111 = arith.constant 0.000000e+00 : f32
    %168 = vector.broadcast %cst_111 : f32 to vector<2x128xf32>
    %169 = tpu.concatenate %110, %126, %167, %168 in 0 : vector<3x128xf32>, vector<2x128xf32>, vector<1x128xf32>, vector<2x128xf32> -> vector<8x128xf32>
    %c0_112 = arith.constant 0 : index
    %c0_113 = arith.constant 0 : index
    %170 = vector.load %arg28[%c0_112, %c0_113] : memref<8x128xf32, #tpu.memory_space<vmem>>, vector<8x128xf32>
    tpu.vector_store %arg28[%c0_112, %c0_113], %169 {strides = array<i32>} : memref<8x128xf32, #tpu.memory_space<vmem>>, vector<8x128xf32>,
    return
  }
  func.func @transform_0(%arg0: i32) -> (i32, i32) {
    %c0_i32 = arith.constant 0 : i32
    %c0_i32_0 = arith.constant 0 : i32
    %c0_i32_1 = arith.constant 0 : i32
    return %c0_i32, %c0_i32_0 : i32, i32
  }
  func.func @transform_1(%arg0: i32) -> (i32, i32) {
    %c0_i32 = arith.constant 0 : i32
    %c0_i32_0 = arith.constant 0 : i32
    %c0_i32_1 = arith.constant 0 : i32
    return %c0_i32, %c0_i32_0 : i32, i32
  }
  func.func @transform_2(%arg0: i32) -> (i32, i32) {
    %c0_i32 = arith.constant 0 : i32
    %c0_i32_0 = arith.constant 0 : i32
    %c0_i32_1 = arith.constant 0 : i32
    return %c0_i32, %c0_i32_0 : i32, i32
  }
  func.func @transform_3(%arg0: i32) -> (i32, i32) {
    %c0_i32 = arith.constant 0 : i32
    %c0_i32_0 = arith.constant 0 : i32
    %c0_i32_1 = arith.constant 0 : i32
    return %c0_i32, %c0_i32_0 : i32, i32
  }
  func.func @transform_4(%arg0: i32) -> (i32, i32, i32) {
    %c0_i32 = arith.constant 0 : i32
    %c0_i32_0 = arith.constant 0 : i32
    %c0_i32_1 = arith.constant 0 : i32
    %c0_i32_2 = arith.constant 0 : i32
    return %c0_i32, %c0_i32_0, %c0_i32_1 : i32, i32, i32
  }
  func.func @transform_5(%arg0: i32) -> (i32, i32, i32) {
    %c0_i32 = arith.constant 0 : i32
    %c0_i32_0 = arith.constant 0 : i32
    %c0_i32_1 = arith.constant 0 : i32
    %c0_i32_2 = arith.constant 0 : i32
    return %c0_i32, %c0_i32_0, %c0_i32_1 : i32, i32, i32
  }
  func.func @transform_6(%arg0: i32) -> (i32, i32, i32) {
    %c0_i32 = arith.constant 0 : i32
    %c0_i32_0 = arith.constant 0 : i32
    %c0_i32_1 = arith.constant 0 : i32
    %c0_i32_2 = arith.constant 0 : i32
    return %c0_i32, %c0_i32_0, %c0_i32_1 : i32, i32, i32
  }
  func.func @transform_7(%arg0: i32) -> (i32, i32, i32) {
    %c0_i32 = arith.constant 0 : i32
    %c0_i32_0 = arith.constant 0 : i32
    %c0_i32_1 = arith.constant 0 : i32
    %c0_i32_2 = arith.constant 0 : i32
    return %c0_i32, %c0_i32_0, %c0_i32_1 : i32, i32, i32
  }
  func.func @transform_8(%arg0: i32) -> (i32, i32, i32) {
    %c0_i32 = arith.constant 0 : i32
    %c0_i32_0 = arith.constant 0 : i32
    %c0_i32_1 = arith.constant 0 : i32
    %c0_i32_2 = arith.constant 0 : i32
    return %c0_i32, %c0_i32_0, %c0_i32_1 : i32, i32, i32
  }
  func.func @transform_9(%arg0: i32) -> (i32, i32, i32) {
    %c0_i32 = arith.constant 0 : i32
    %c0_i32_0 = arith.constant 0 : i32
    %c0_i32_1 = arith.constant 0 : i32
    %c0_i32_2 = arith.constant 0 : i32
    return %c0_i32, %c0_i32_0, %c0_i32_1 : i32, i32, i32
  }
  func.func @transform_10(%arg0: i32) -> (i32, i32, i32) {
    %c0_i32 = arith.constant 0 : i32
    %c0_i32_0 = arith.constant 0 : i32
    %c0_i32_1 = arith.constant 0 : i32
    %c0_i32_2 = arith.constant 0 : i32
    return %c0_i32, %c0_i32_0, %c0_i32_1 : i32, i32, i32
  }
  func.func @transform_11(%arg0: i32) -> (i32, i32, i32) {
    %c0_i32 = arith.constant 0 : i32
    %c0_i32_0 = arith.constant 0 : i32
    %c0_i32_1 = arith.constant 0 : i32
    %c0_i32_2 = arith.constant 0 : i32
    return %c0_i32, %c0_i32_0, %c0_i32_1 : i32, i32, i32
  }
  func.func @transform_12(%arg0: i32) -> (i32, i32) {
    %c0_i32 = arith.constant 0 : i32
    %c0_i32_0 = arith.constant 0 : i32
    %c0_i32_1 = arith.constant 0 : i32
    return %c0_i32, %c0_i32_0 : i32, i32
  }
  func.func @transform_13(%arg0: i32) -> (i32, i32) {
    %c0_i32 = arith.constant 0 : i32
    %c0_i32_0 = arith.constant 0 : i32
    %c0_i32_1 = arith.constant 0 : i32
    return %c0_i32, %c0_i32_0 : i32, i32
  }
  func.func @transform_14(%arg0: i32) -> (i32, i32) {
    %c0_i32 = arith.constant 0 : i32
    %c0_i32_0 = arith.constant 0 : i32
    %c0_i32_1 = arith.constant 0 : i32
    return %c0_i32, %c0_i32_0 : i32, i32
  }
  func.func @transform_15(%arg0: i32) -> (i32, i32) {
    %c0_i32 = arith.constant 0 : i32
    %c0_i32_0 = arith.constant 0 : i32
    %c0_i32_1 = arith.constant 0 : i32
    return %c0_i32, %c0_i32_0 : i32, i32
  }
  func.func @transform_16(%arg0: i32) -> (i32, i32) {
    %c0_i32 = arith.constant 0 : i32
    %c0_i32_0 = arith.constant 0 : i32
    %c0_i32_1 = arith.constant 0 : i32
    return %c0_i32, %c0_i32_0 : i32, i32
  }
  func.func @transform_17(%arg0: i32) -> (i32, i32) {
    %c0_i32 = arith.constant 0 : i32
    %c0_i32_0 = arith.constant 0 : i32
    %c0_i32_1 = arith.constant 0 : i32
    return %c0_i32, %c0_i32_0 : i32, i32
  }
  func.func @transform_18(%arg0: i32) -> (i32, i32) {
    %c0_i32 = arith.constant 0 : i32
    %c0_i32_0 = arith.constant 0 : i32
    %c0_i32_1 = arith.constant 0 : i32
    return %c0_i32, %c0_i32_0 : i32, i32
  }
  func.func @transform_19(%arg0: i32) -> (i32, i32) {
    %c0_i32 = arith.constant 0 : i32
    %c0_i32_0 = arith.constant 0 : i32
    %c0_i32_1 = arith.constant 0 : i32
    return %c0_i32, %c0_i32_0 : i32, i32
  }
  func.func @transform_20(%arg0: i32) -> (i32, i32) {
    %c0_i32 = arith.constant 0 : i32
    %c0_i32_0 = arith.constant 0 : i32
    %c0_i32_1 = arith.constant 0 : i32
    return %c0_i32, %c0_i32_0 : i32, i32
  }
  func.func @transform_21(%arg0: i32) -> (i32, i32) {
    %c0_i32 = arith.constant 0 : i32
    %c0_i32_0 = arith.constant 0 : i32
    %c0_i32_1 = arith.constant 0 : i32
    return %c0_i32, %c0_i32_0 : i32, i32
  }
  func.func @transform_22(%arg0: i32) -> (i32, i32) {
    %c0_i32 = arith.constant 0 : i32
    %c0_i32_0 = arith.constant 0 : i32
    %c0_i32_1 = arith.constant 0 : i32
    return %c0_i32, %c0_i32_0 : i32, i32
  }
  func.func @transform_23(%arg0: i32) -> (i32, i32) {
    %c0_i32 = arith.constant 0 : i32
    %c0_i32_0 = arith.constant 0 : i32
    %c0_i32_1 = arith.constant 0 : i32
    return %c0_i32, %c0_i32_0 : i32, i32
  }
  func.func @transform_24(%arg0: i32) -> (i32, i32) {
    %c0_i32 = arith.constant 0 : i32
    %c0_i32_0 = arith.constant 0 : i32
    %c0_i32_1 = arith.constant 0 : i32
    return %c0_i32, %c0_i32_0 : i32, i32
  }
  func.func @transform_25(%arg0: i32) -> (i32, i32) {
    %c0_i32 = arith.constant 0 : i32
    %c0_i32_0 = arith.constant 0 : i32
    %c0_i32_1 = arith.constant 0 : i32
    return %c0_i32, %c0_i32_0 : i32, i32
  }
  func.func @transform_26(%arg0: i32) -> (i32, i32) {
    %c0_i32 = arith.constant 0 : i32
    %c0_i32_0 = arith.constant 0 : i32
    %c0_i32_1 = arith.constant 0 : i32
    return %c0_i32, %c0_i32_0 : i32, i32
  }
  func.func @transform_27(%arg0: i32) -> (i32, i32) {
    %c0_i32 = arith.constant 0 : i32
    %c0_i32_0 = arith.constant 0 : i32
    %c0_i32_1 = arith.constant 0 : i32
    return %c0_i32, %c0_i32_0 : i32, i32
  }
}

</mosaic_0001>

<bundles_post_ra>
// kernel: tpu_custom_call.1
= control target key start
LH: loop header
LB: loop body
LE: loop exit
PB: predicated region body
PF: predicated region fallthrough
CT: control target
= control target key end

     0   :  { %s1973_s0 = inlined_call_operand.vmem [shape: f32[32,128], index: 0, kind: input, shape index: {}]   ;;  %s1974_s1 = inlined_call_operand.vmem [shape: f32[1,128], index: 1, kind: input, shape index: {}]   ;;  %s1975_s2 = inlined_call_operand.vmem [shape: f32[1,128], index: 2, kind: input, shape index: {}]   ;;  %s1976_s3 = inlined_call_operand.vmem [shape: f32[1,128], index: 3, kind: input, shape index: {}]   ;;  %s1977_s4 = inlined_call_operand.vmem [shape: f32[2,32,96], index: 4, kind: input, shape index: {}]   ;;  %s1978_s5 = inlined_call_operand.vmem [shape: f32[2,32,1], index: 5, kind: input, shape index: {}]   ;;  %s1979_s6 = inlined_call_operand.vmem [shape: f32[2,32,1], index: 6, kind: input, shape index: {}]   ;;  %s1980_s7 = inlined_call_operand.vmem [shape: f32[2,32,1], index: 7, kind: input, shape index: {}]   ;;  %s1981_s8 = inlined_call_operand.vmem [shape: f32[2,32,96], index: 8, kind: input, shape index: {}]   ;;  %s1982_s9 = inlined_call_operand.vmem [shape: f32[2,32,1], index: 9, kind: input, shape index: {}]   ;;  %s1983_s10 = inlined_call_operand.vmem [shape: f32[2,32,1], index: 10, kind: input, shape index: {}]   ;;  %s1984_s11 = inlined_call_operand.vmem [shape: f32[2,32,1], index: 11, kind: input, shape index: {}]   ;;  %s1985_s12 = inlined_call_operand.vmem [shape: f32[3,96], index: 12, kind: input, shape index: {}]   ;;  %s1986_s13 = inlined_call_operand.vmem [shape: f32[3,1], index: 13, kind: input, shape index: {}]   ;;  %s1987_s14 = inlined_call_operand.vmem [shape: f32[2,96], index: 14, kind: input, shape index: {}]   ;;  %s1988_s15 = inlined_call_operand.vmem [shape: f32[2,1], index: 15, kind: input, shape index: {}]   ;;  %s1989_s16 = inlined_call_operand.vmem [shape: f32[32,32], index: 16, kind: input, shape index: {}]   ;;  %s1990_s17 = inlined_call_operand.vmem [shape: f32[32,32], index: 17, kind: input, shape index: {}]   ;;  %s1991_s18 = inlined_call_operand.vmem [shape: f32[32,1], index: 18, kind: input, shape index: {}]   ;;  %s1992_s19 = inlined_call_operand.vmem [shape: f32[32,1], index: 19, kind: input, shape index: {}]   ;;  %s1993_s20 = inlined_call_operand.vmem [shape: f32[32,1], index: 20, kind: input, shape index: {}]   ;;  %s1994_s21 = inlined_call_operand.vmem [shape: f32[16,96], index: 21, kind: input, shape index: {}]   ;;  %s1995_s22 = inlined_call_operand.vmem [shape: f32[16,1], index: 22, kind: input, shape index: {}]   ;;  %s1996_s23 = inlined_call_operand.vmem [shape: f32[16,1], index: 23, kind: input, shape index: {}]   ;;  %s1997_s24 = inlined_call_operand.vmem [shape: f32[16,1], index: 24, kind: input, shape index: {}]   ;;  %s1998_s25 = inlined_call_operand.vmem [shape: f32[1,16], index: 25, kind: input, shape index: {}]   ;;  %s1999_s26 = inlined_call_operand.<no memory space> [shape: f32[1,1], index: 26, kind: input, shape index: {}]   ;;  %s2000_s27 = inlined_call_operand.hbm [shape: f32[8,128], index: 27, kind: output, shape index: {}]  }
   0x1   :  { %2017 = sst [smem:[#allocation6_spill]] %s1973_s0  ;;  %v32_v0 = vstv %s1999_s26 }
   0x2   :  { %2018 = sst [smem:[#allocation7_spill]] %s1974_s1  ;;  %33 = vst [vmem:[#allocation2] sm:$0x1] %v32_v0 }
   0x3   :  { %2019 = sst [smem:[#allocation8_spill]] %s1975_s2 }
   0x4   :  { %2020 = sst [smem:[#allocation9_spill]] %s1976_s3 }
   0x5   :  { %2021 = sst [smem:[#allocation10_spill]] %s1977_s4 }
   0x6   :  { %2022 = sst [smem:[#allocation11_spill]] %s1978_s5 }
   0x7   :  { %2023 = sst [smem:[#allocation12_spill]] %s1979_s6 }
   0x8   :  { %2024 = sst [smem:[#allocation13_spill]] %s1980_s7 }
   0x9   :  { %2025 = sst [smem:[#allocation14_spill]] %s1981_s8 }
   0xa   :  { %2026 = sst [smem:[#allocation15_spill]] %s1982_s9 }
   0xb   :  { %2027 = sst [smem:[#allocation16_spill]] %s1983_s10 }
   0xc   :  { %2028 = sst [smem:[#allocation17_spill]] %s1984_s11 }
   0xd   :  { %2029 = sst [smem:[#allocation18_spill]] %s1987_s14 }
   0xe   :  { %2030 = sst [smem:[#allocation19_spill]] %s1994_s21 }
   0xf   :  { %2031 = sst [smem:[#allocation20_spill]] %s1998_s25 }
  0x10   :  { %2032 = sst [smem:[#allocation21_spill]] %s2000_s27 }
  0x11   :  { %s2033_s9 = sld [smem:[#allocation6_spill]]  ;;  %s2014_s0 = smov 127   ;;  %v1253_v3 = vmov 0  }
  0x12   :  { %s2012_s10 = smov 1   ;;  %1217 = vset.pattern.permute.xlu1 %v1253_v3  ;;  %1216 = vset.pattern.permute.xlu0 %v1253_v3 }
  0x13   :  { %1215 = vset.pattern.permute.xlu2 %v1253_v3 }
  0x17   :  { %v1401_v1 = vld [vmem:[%s2033_s9 + $0x18] sm:$0xff]  ;;  %v1406_v2 = vld [vmem:[%s2033_s9 + $0x8] sm:$0xff] }
  0x18   :  { %124 = vrot.lane.b32.xlu0 %v1401_v1, %s2014_s0  ;;  %120 = vrot.lane.b32.xlu1 %v1406_v2, %s2014_s0 }
  0x19   :  { %109 = vrot.lane.b32.xlu2 %v1401_v1, %s2012_s10 }
  0x1a   :  { %34 = vsyncpa [#allocation4], 0  ;;  %v1417_v4 = vld [vmem:[%s2033_s9 + $0x10] sm:$0xff]  ;;  %v1422_v5 = vld [vmem:[%s2033_s9] sm:$0xff]  ;;  %s2034_s3 = sld [smem:[#allocation11_spill]]  ;;  %vm153_vm0 = vcmask 785408  }
  0x1b   :  { %s2035_s9 = sld [smem:[#allocation15_spill]]  ;;  %s2044_s2 = smov 127   ;;  %vm821_vm1 = vcmask 261120   ;;  %vm1097_vm2 = vcmask 130048   ;;  %vm1127_vm3 = vcmask 1042432   ;;  %vm1129_vm4 = vcmask 1044480  }
  0x1c   :  { %s2036_s26 = sld [smem:[#allocation12_spill]]  ;;  %s2045_s7 = smov 1   ;;  %vm1131_vm5 = vcmask 1045504  }
  0x1d   :  { %s2037_s4 = sld [smem:[#allocation16_spill]] }
  0x1e   :  { %s2038_s6 = sld [smem:[#allocation13_spill]] }
  0x1f   :  { %s2039_s5 = sld [smem:[#allocation17_spill]] }
  0x20   :  { %122 = vrot.lane.b32.xlu0 %v1417_v4, %s2014_s0  ;;  %118 = vrot.lane.b32.xlu1 %v1422_v5, %s2014_s0  ;;  %v102_v6 = vld [vmem:[%s2034_s3 + $0x18] sm:$0xff]  ;;  %v101_v7 = vld [vmem:[%s2034_s3 + $0x10] sm:$0xff]  ;;  %s2040_s30 = sld [smem:[#allocation8_spill]] }
  0x21   :  { %107 = vrot.lane.b32.xlu2 %v1417_v4, %s2012_s10  ;;  %v262_v8 = vld [vmem:[%s2035_s9 + $0x18] sm:$0xff]  ;;  %v261_v10 = vld [vmem:[%s2035_s9 + $0x10] sm:$0xff]  ;;  %v100_v11 = vld [vmem:[%s2034_s3 + $0x8] sm:$0xff]  ;;  %s2041_s11 = sld [smem:[#allocation7_spill]] }
  0x22   :  { %v198_v9 = vld [vmem:[%s2036_s26 + $0x18] sm:$0xff]  ;;  %v197_v13 = vld [vmem:[%s2036_s26 + $0x10] sm:$0xff]  ;;  %v260_v14 = vld [vmem:[%s2035_s9 + $0x8] sm:$0xff]  ;;  %s2042_s8 = sld [smem:[#allocation10_spill]] }
  0x23   :  { %v327_v12 = vld [vmem:[%s2037_s4 + $0x18] sm:$0xff]  ;;  %v326_v16 = vld [vmem:[%s2037_s4 + $0x10] sm:$0xff]  ;;  %v99_v17 = vld [vmem:[%s2034_s3] sm:$0xff]  ;;  %s2043_s29 = sld [smem:[#allocation14_spill]] }
  0x24   :  { %v226_v15 = vld [vmem:[%s2038_s6 + $0x18] sm:$0xff]  ;;  %v196_v18 = vld [vmem:[%s2036_s26 + $0x8] sm:$0xff]  ;;  %v259_v19 = vld [vmem:[%s2035_s9] sm:$0xff] }
  0x25   :  { %v325_v20 = vld [vmem:[%s2037_s4 + $0x8] sm:$0xff]  ;;  %v223_v22 = vld [vmem:[%s2038_s6] sm:$0xff]  ;;  %v355_v23 = vld [vmem:[%s2039_s5 + $0x18] sm:$0xff] }
  0x26   :  { %v224_v21 = vld [vmem:[%s2038_s6 + $0x8] sm:$0xff]  ;;  %v195_v24 = vld [vmem:[%s2036_s26] sm:$0xff]  ;;  %v225_v25 = vld [vmem:[%s2038_s6 + $0x10] sm:$0xff] }
  0x27   :  { %v353_v26 = vld [vmem:[%s2039_s5 + $0x8] sm:$0xff]  ;;  %v354_v27 = vld [vmem:[%s2039_s5 + $0x10] sm:$0xff]  ;;  %v1503_v28 = vld [vmem:[%s2040_s30] ss:$0 sm:$0xff]  ;;  %s2048_s30 = sld [smem:[#allocation7_spill]] }
  0x28   :  { %105 = vrot.lane.b32.xlu0 %v1406_v2, %s2012_s10  ;;  %103 = vrot.lane.b32.xlu1 %v1422_v5, %s2012_s10  ;;  %v324_v29 = vld [vmem:[%s2037_s4] sm:$0xff]  ;;  %v96_v50 = vld [vmem:[%s2042_s8 + $0x8] sm:$0xff]  ;;  %s2052_s10 = sld [smem:[#allocation21_spill]] }
  0x29   :  { %150 = vperm.xlu2 %1215, %v102_v6   ;;  %v352_v33 = vld [vmem:[%s2039_s5] sm:$0xff]  ;;  %v256_v51 = vld [vmem:[%s2043_s29 + $0x8] sm:$0xff]  ;;  %v97_v52 = vld [vmem:[%s2042_s8 + $0x10] sm:$0xff] }
  0x2a   :  { %v1520_v40 = vld [vmem:[%s2041_s11] ss:$0 sm:$0xff]  ;;  %v257_v53 = vld [vmem:[%s2043_s29 + $0x10] sm:$0xff]  ;;  %v98_v54 = vld [vmem:[%s2042_s8 + $0x18] sm:$0xff] }
  0x2b   :  { %v95_v48 = vld [vmem:[%s2042_s8] sm:$0xff]  ;;  %v258_v55 = vld [vmem:[%s2043_s29 + $0x18] sm:$0xff] }
  0x2c   :  { %v255_v49 = vld [vmem:[%s2043_s29] sm:$0xff] }
  0x30   :  { %145 = vperm.xlu1 %1217, %v101_v7   ;;  %280 = vperm.xlu0 %1216, %v262_v8  }
  0x31   :  { %216 = vperm.xlu2 %1215, %v198_v9  }
  0x38   :  { %275 = vperm.xlu1 %1217, %v261_v10   ;;  %140 = vperm.xlu0 %1216, %v100_v11  }
  0x39   :  { %345 = vperm.xlu2 %1215, %v327_v12  }
  0x40   :  { %211 = vperm.xlu1 %1217, %v197_v13   ;;  %270 = vperm.xlu0 %1216, %v260_v14  }
  0x41   :  { %244 = vperm.xlu2 %1215, %v226_v15  }
  0x48   :  { %340 = vperm.xlu1 %1217, %v326_v16   ;;  %135 = vperm.xlu0 %1216, %v99_v17  }
  0x49   :  { %373 = vperm.xlu2 %1215, %v355_v23  }
  0x50   :  { %206 = vperm.xlu1 %1217, %v196_v18   ;;  %265 = vperm.xlu0 %1216, %v259_v19  }
  0x51   :  { %239 = vperm.xlu2 %1215, %v225_v25  }
  0x58   :  { %335 = vperm.xlu1 %1217, %v325_v20   ;;  %201 = vperm.xlu0 %1216, %v195_v24  }
  0x59   :  { %368 = vperm.xlu2 %1215, %v354_v27  }
  0x60   :  { %234 = vperm.xlu1 %1217, %v224_v21   ;;  %363 = vperm.xlu0 %1216, %v353_v26  }
  0x61   :  { %330 = vperm.xlu2 %1215, %v324_v29  }
  0x68   :  { %229 = vperm.xlu1 %1217, %v223_v22  }
  0x69   :  { %358 = vperm.xlu2 %1215, %v352_v33  }
  0x73   :  { %v110_v37 = vpop.permute.xlu2 %109 }
  0x74   :  { %v117_v43 = vmul.f32 %v1520_v40, %v110_v37 }
  0x7b   :  { %v108_v41 = vpop.permute.xlu2 %107 }
  0x7c   :  { %v116_v44 = vmul.f32 %v1520_v40, %v108_v41 }
  0x83   :  { %v151_v59 = vpop.permute.xlu2 %150 }
  0x8a   :  { %v125_v30 = vpop.permute.xlu0 %124  ;;  %v121_v31 = vpop.permute.xlu1 %120 }
  0x8b   :  { %v132_v32 = vmul.f32 %v1503_v28, %v125_v30  ;;  %v130_v38 = vmul.f32 %v1503_v28, %v121_v31  ;;  %v217_v62 = vpop.permute.xlu2 %216 }
  0x8d   :  { %170 = vmatpush.msra.mxu0 %v132_v32  ;;  %299 = vmatpush.msra.mxu1 %v132_v32 }
  0x92   :  { %v123_v34 = vpop.permute.xlu0 %122  ;;  %v119_v35 = vpop.permute.xlu1 %118 }
  0x93   :  { %v131_v36 = vmul.f32 %v1503_v28, %v123_v34  ;;  %v129_v39 = vmul.f32 %v1503_v28, %v119_v35 }
  0x95   :  { %171 = vmatpush.msra.mxu0 %v131_v36  ;;  %300 = vmatpush.msra.mxu1 %v131_v36 }
  0x97   :  { %172 = vmatpush.msra.mxu0 %v130_v38  ;;  %301 = vmatpush.msra.mxu1 %v130_v38 }
  0x99   :  { %173 = vmatpush.msra.mxu0 %v129_v39  ;;  %302 = vmatpush.msra.mxu1 %v129_v39 }
  0x9a   :  { %v106_v42 = vpop.permute.xlu0 %105  ;;  %v104_v45 = vpop.permute.xlu1 %103 }
  0x9b   :  { %174 = vmatpush.msra.mxu0 %v1401_v1  ;;  %303 = vmatpush.msra.mxu1 %v1401_v1  ;;  %v115_v46 = vmul.f32 %v1520_v40, %v106_v42  ;;  %v114_v47 = vmul.f32 %v1520_v40, %v104_v45  ;;  %v346_v1 = vpop.permute.xlu2 %345 }
  0x9d   :  { %175 = vmatpush.msra.mxu0 %v1417_v4  ;;  %304 = vmatpush.msra.mxu1 %v1417_v4 }
  0x9f   :  { %176 = vmatpush.msra.mxu0 %v1406_v2  ;;  %305 = vmatpush.msra.mxu1 %v1406_v2 }
  0xa1   :  { %177 = vmatpush.msra.mxu0 %v1422_v5  ;;  %306 = vmatpush.msra.mxu1 %v1422_v5 }
  0xa2   :  { %v146_v56 = vpop.permute.xlu1 %145  ;;  %v281_v58 = vpop.permute.xlu0 %280 }
  0xa3   :  { %178 = vmatpush.msra.mxu0 %v117_v43  ;;  %307 = vmatpush.msra.mxu1 %v117_v43  ;;  %v245_v4 = vpop.permute.xlu2 %244 }
  0xa5   :  { %179 = vmatpush.msra.mxu0 %v116_v44  ;;  %308 = vmatpush.msra.mxu1 %v116_v44 }
  0xa7   :  { %180 = vmatpush.msra.mxu0 %v115_v46  ;;  %309 = vmatpush.msra.mxu1 %v115_v46 }
  0xa9   :  { %181 = vmatpush.msra.mxu0 %v114_v47  ;;  %310 = vmatpush.msra.mxu1 %v114_v47 }
  0xaa   :  { %1150 = vmatmul.msk.f32.vlgmr.msra.gmra.mxu0 %vm153_vm0, %v95_v48  ;;  %1154 = vmatmul.msk.f32.vlgmr.msra.gmra.mxu1 %vm153_vm0, %v255_v49  ;;  %v276_v57 = vpop.permute.xlu1 %275  ;;  %v141_v61 = vpop.permute.xlu0 %140 }
  0xab   :  { %v374_v7 = vpop.permute.xlu2 %373 }
  0xb2   :  { %1151 = vmatmul.msk.f32.gmra.mxu0 %vm153_vm0, %v96_v50  ;;  %1155 = vmatmul.msk.f32.gmra.mxu1 %vm153_vm0, %v256_v51  ;;  %v212_v60 = vpop.permute.xlu1 %211  ;;  %v271_v0 = vpop.permute.xlu0 %270 }
  0xb3   :  { %v240_v13 = vpop.permute.xlu2 %239 }
  0xba   :  { %1152 = vmatmul.msk.f32.gmra.mxu0 %vm153_vm0, %v97_v52  ;;  %1156 = vmatmul.msk.f32.gmra.mxu1 %vm153_vm0, %v257_v53  ;;  %v341_v63 = vpop.permute.xlu1 %340  ;;  %v136_v3 = vpop.permute.xlu0 %135 }
  0xbb   :  { %v369_v25 = vpop.permute.xlu2 %368 }
  0xc2   :  { %1153 = vmatmul.msk.f32.gmra.mxu0 %vm153_vm0, %v98_v54  ;;  %1157 = vmatmul.msk.f32.gmra.mxu1 %vm153_vm0, %v258_v55  ;;  %v207_v2 = vpop.permute.xlu1 %206  ;;  %v266_v6 = vpop.permute.xlu0 %265 }
  0xc3   :  { %v331_v39 = vpop.permute.xlu2 %330 }
  0xca   :  { %v336_v5 = vpop.permute.xlu1 %335  ;;  %v202_v12 = vpop.permute.xlu0 %201 }
  0xcb   :  { %v359_v55 = vpop.permute.xlu2 %358 }
  0xd2   :  { %v235_v8 = vpop.permute.xlu1 %234  ;;  %v364_v24 = vpop.permute.xlu0 %363 }
  0xda   :  { %v230_v15 = vpop.permute.xlu1 %229 }
 0x127   :  { %v183_v9 = vpop.f32.mrf.mxu0  ;;  %v312_v10 = vpop.f32.mrf.mxu1 }
 0x128   :  { %v184_v11 = vadd.f32 %v183_v9, %v136_v3  ;;  %v313_v47 = vadd.f32 %v312_v10, %v266_v6  ;;  %v1177_v3 = vld [vmem:[%s2038_s6 + $0x38] sm:$0xff]  ;;  %v1176_v9 = vld [vmem:[%s2038_s6 + $0x30] sm:$0xff]  ;;  %v1182_v10 = vld [vmem:[%s2035_s9 + $0x20] sm:$0xff] }
 0x129   :  { %v1197_v6 = vld [vmem:[%s2039_s5 + $0x38] sm:$0xff] }
 0x12a   :  { %v219_v14 = vmul.f32 %v202_v12, %v184_v11  ;;  %v348_v52 = vmul.f32 %v331_v39, %v313_v47  ;;  %v1175_v11 = vld [vmem:[%s2038_s6 + $0x28] sm:$0xff]  ;;  %v1196_v12 = vld [vmem:[%s2039_s5 + $0x30] sm:$0xff] }
 0x12c   :  { %v247_v16 = vadd.f32 %v230_v15, %v219_v14  ;;  %v1174_v14 = vld [vmem:[%s2038_s6 + $0x20] sm:$0xff] }
 0x12d   :  { %v1190_v15 = vld [vmem:[%s2037_s4 + $0x20] sm:$0xff] }
 0x12e   :  { %v1564_v17 = vmax.f32 %v247_v16, 0.0  ;;  %v1195_v16 = vld [vmem:[%s2039_s5 + $0x28] sm:$0xff] }
 0x12f   :  { %v186_v18 = vpop.f32.mrf.mxu0  ;;  %v315_v19 = vpop.f32.mrf.mxu1 }
 0x130   :  { %v187_v20 = vadd.f32 %v186_v18, %v141_v61  ;;  %v316_v21 = vadd.f32 %v315_v19, %v271_v0  ;;  %406 = vrot.lane.b32.xlu0 %v1564_v17, %s2044_s2  ;;  %v1164_v61 = vld [vmem:[%s2034_s3 + $0x30] sm:$0xff]  ;;  %v1193_v0 = vld [vmem:[%s2037_s4 + $0x38] sm:$0xff]  ;;  %v1194_v19 = vld [vmem:[%s2039_s5 + $0x20] sm:$0xff]  ;;  %s2047_s5 = sld [smem:[#allocation19_spill]] }
 0x131   :  { %v906_v18 = vld [vmem:[%s1991_s18 + $0x10] sm:$0xff] }
 0x132   :  { %v220_v22 = vmul.f32 %v207_v2, %v187_v20  ;;  %v349_v23 = vmul.f32 %v336_v5, %v316_v21  ;;  %v1192_v2 = vld [vmem:[%s2037_s4 + $0x30] sm:$0xff]  ;;  %v1171_v5 = vld [vmem:[%s2036_s26 + $0x28] sm:$0xff]  ;;  %v907_v20 = vld [vmem:[%s1991_s18 + $0x18] sm:$0xff] }
 0x133   :  { %v934_v21 = vld [vmem:[%s1992_s19 + $0x10] sm:$0xff] }
 0x134   :  { %v377_v26 = vadd.f32 %v364_v24, %v349_v23  ;;  %v248_v27 = vadd.f32 %v235_v8, %v220_v22  ;;  %v1191_v8 = vld [vmem:[%s2037_s4 + $0x28] sm:$0xff]  ;;  %v935_v22 = vld [vmem:[%s1992_s19 + $0x18] sm:$0xff] }
 0x136   :  { %v1568_v29 = vmax.f32 %v377_v26, 0.0  ;;  %v1570_v30 = vmax.f32 %v248_v27, 0.0  ;;  %v933_v26 = vld [vmem:[%s1992_s19 + $0x8] sm:$0xff]  ;;  %v963_v27 = vld [vmem:[%s1993_s20 + $0x18] sm:$0xff] }
 0x137   :  { %v189_v31 = vpop.f32.mrf.mxu0  ;;  %v318_v32 = vpop.f32.mrf.mxu1 }
 0x138   :  { %v190_v33 = vadd.f32 %v189_v31, %v146_v56  ;;  %v319_v34 = vadd.f32 %v318_v32, %v276_v57  ;;  %565 = vrot.lane.b32.xlu2 %v1568_v29, %s2044_s2  ;;  %408 = vrot.lane.b32.xlu1 %v1570_v30, %s2044_s2  ;;  %v376_v56 = vadd.f32 %v359_v55, %v348_v52 }
 0x13a   :  { %v221_v35 = vmul.f32 %v212_v60, %v190_v33  ;;  %v350_v36 = vmul.f32 %v341_v63, %v319_v34  ;;  %v1594_v57 = vmax.f32 %v376_v56, 0.0  ;;  %v1184_v60 = vld [vmem:[%s2035_s9 + $0x30] sm:$0xff]  ;;  %v904_v34 = vld [vmem:[%s1991_s18] sm:$0xff] }
 0x13b   :  { %v1172_v63 = vld [vmem:[%s2036_s26 + $0x30] sm:$0xff] }
 0x13c   :  { %v249_v37 = vadd.f32 %v240_v13, %v221_v35  ;;  %v378_v38 = vadd.f32 %v369_v25, %v350_v36  ;;  %v1170_v13 = vld [vmem:[%s2036_s26 + $0x20] sm:$0xff]  ;;  %v905_v25 = vld [vmem:[%s1991_s18 + $0x8] sm:$0xff]  ;;  %v962_v36 = vld [vmem:[%s1993_s20 + $0x10] sm:$0xff]  ;;  %s2051_s18 = sld [smem:[#allocation9_spill]] }
 0x13d   :  { %v961_v35 = vld [vmem:[%s1993_s20 + $0x8] sm:$0xff] }
 0x13e   :  { %v1576_v41 = vmax.f32 %v249_v37, 0.0  ;;  %v1578_v42 = vmax.f32 %v378_v38, 0.0 }
 0x13f   :  { %v192_v43 = vpop.f32.mrf.mxu0  ;;  %v321_v44 = vpop.f32.mrf.mxu1 }
 0x140   :  { %v193_v45 = vadd.f32 %v192_v43, %v151_v59  ;;  %v322_v46 = vadd.f32 %v321_v44, %v281_v58  ;;  %410 = vrot.lane.b32.xlu2 %v1576_v41, %s2044_s2  ;;  %567 = vrot.lane.b32.xlu0 %v1578_v42, %s2044_s2  ;;  %v1185_v58 = vld [vmem:[%s2035_s9 + $0x38] sm:$0xff] }
 0x141   :  { %v1165_v59 = vld [vmem:[%s2034_s3 + $0x38] sm:$0xff] }
 0x142   :  { %v222_v48 = vmul.f32 %v217_v62, %v193_v45  ;;  %v351_v49 = vmul.f32 %v346_v1, %v322_v46  ;;  %v1173_v62 = vld [vmem:[%s2036_s26 + $0x38] sm:$0xff]  ;;  %v1163_v1 = vld [vmem:[%s2034_s3 + $0x28] sm:$0xff]  ;;  %v932_v46 = vld [vmem:[%s1992_s19] sm:$0xff] }
 0x144   :  { %v379_v50 = vadd.f32 %v374_v7, %v351_v49  ;;  %v250_v51 = vadd.f32 %v245_v4, %v222_v48  ;;  %v1183_v4 = vld [vmem:[%s2035_s9 + $0x28] sm:$0xff]  ;;  %v1162_v7 = vld [vmem:[%s2034_s3 + $0x20] sm:$0xff]  ;;  %s2050_s3 = sld [smem:[#allocation20_spill]] }
 0x145   :  { %v960_v48 = vld [vmem:[%s1993_s20] sm:$0xff] }
 0x146   :  { %v1584_v53 = vmax.f32 %v379_v50, 0.0  ;;  %v1586_v54 = vmax.f32 %v250_v51, 0.0 }
 0x148   :  { %555 = vrot.lane.b32.xlu2 %v1578_v42, %s2045_s7  ;;  %569 = vrot.lane.b32.xlu1 %v1584_v53, %s2044_s2 }
 0x149   :  { %412 = vrot.lane.b32.xlu0 %v1586_v54, %s2044_s2 }
 0x150   :  { %400 = vrot.lane.b32.xlu2 %v1586_v54, %s2045_s7  ;;  %563 = vrot.lane.b32.xlu1 %v1594_v57, %s2044_s2 }
 0x151   :  { %396 = vrot.lane.b32.xlu0 %v1570_v30, %s2045_s7 }
 0x158   :  { %398 = vrot.lane.b32.xlu1 %v1576_v41, %s2045_s7  ;;  %394 = vrot.lane.b32.xlu2 %v1564_v17, %s2045_s7 }
 0x159   :  { %557 = vrot.lane.b32.xlu0 %v1584_v53, %s2045_s7 }
 0x160   :  { %553 = vrot.lane.b32.xlu1 %v1568_v29, %s2045_s7  ;;  %592 = vperm.xlu2 %1215, %v1185_v58  }
 0x161   :  { %551 = vrot.lane.b32.xlu0 %v1594_v57, %s2045_s7 }
 0x168   :  { %435 = vperm.xlu1 %1217, %v1165_v59   ;;  %587 = vperm.xlu2 %1215, %v1184_v60  }
 0x169   :  { %430 = vperm.xlu0 %1216, %v1164_v61  }
 0x170   :  { %501 = vperm.xlu1 %1217, %v1173_v62   ;;  %496 = vperm.xlu2 %1215, %v1172_v63  }
 0x171   :  { %658 = vperm.xlu0 %1216, %v1193_v0  }
 0x178   :  { %425 = vperm.xlu1 %1217, %v1163_v1   ;;  %653 = vperm.xlu2 %1215, %v1192_v2   ;;  %v1178_v1 = vld [vmem:[%s2043_s29 + $0x20] sm:$0xff]  ;;  %v1159_v2 = vld [vmem:[%s2042_s8 + $0x28] sm:$0xff] }
 0x179   :  { %530 = vperm.xlu0 %1216, %v1177_v3   ;;  %v1179_v3 = vld [vmem:[%s2043_s29 + $0x28] sm:$0xff] }
 0x180   :  { %582 = vperm.xlu1 %1217, %v1183_v4   ;;  %491 = vperm.xlu2 %1215, %v1171_v5   ;;  %v1160_v4 = vld [vmem:[%s2042_s8 + $0x30] sm:$0xff] }
 0x181   :  { %687 = vperm.xlu0 %1216, %v1197_v6   ;;  %v1180_v5 = vld [vmem:[%s2043_s29 + $0x30] sm:$0xff]  ;;  %v1161_v6 = vld [vmem:[%s2042_s8 + $0x38] sm:$0xff] }
 0x188   :  { %420 = vperm.xlu1 %1217, %v1162_v7   ;;  %648 = vperm.xlu2 %1215, %v1191_v8   ;;  %v1181_v7 = vld [vmem:[%s2043_s29 + $0x38] sm:$0xff] }
 0x189   :  { %525 = vperm.xlu0 %1216, %v1176_v9  }
 0x190   :  { %577 = vperm.xlu1 %1217, %v1182_v10   ;;  %520 = vperm.xlu2 %1215, %v1175_v11  }
 0x191   :  { %682 = vperm.xlu0 %1216, %v1196_v12  }
 0x192   :  { %v566_v23 = vpop.permute.xlu2 %565 }
 0x193   :  { %v572_v49 = vmul.f32 %v1503_v28, %v566_v23 }
 0x198   :  { %486 = vperm.xlu1 %1217, %v1170_v13   ;;  %515 = vperm.xlu2 %1215, %v1174_v14  }
 0x199   :  { %643 = vperm.xlu0 %1216, %v1190_v15  }
 0x19a   :  { %v411_v31 = vpop.permute.xlu2 %410 }
 0x19b   :  { %v416_v47 = vmul.f32 %v1503_v28, %v411_v31 }
 0x1a0   :  { %677 = vperm.xlu1 %1217, %v1195_v16   ;;  %920 = vperm.xlu2 %1215, %v906_v18  }
 0x1a1   :  { %672 = vperm.xlu0 %1216, %v1194_v19  }
 0x1a2   :  { %v407_v24 = vpop.permute.xlu0 %406  ;;  %v556_v38 = vpop.permute.xlu2 %555 }
 0x1a3   :  { %v414_v51 = vmul.f32 %v1503_v28, %v407_v24 }
 0x1a8   :  { %925 = vperm.xlu1 %1217, %v907_v20   ;;  %948 = vperm.xlu2 %1215, %v934_v21  }
 0x1a9   :  { %953 = vperm.xlu0 %1216, %v935_v22  }
 0x1aa   :  { %v409_v32 = vpop.permute.xlu1 %408  ;;  %v401_v58 = vpop.permute.xlu2 %400 }
 0x1ab   :  { %v415_v50 = vmul.f32 %v1503_v28, %v409_v32  ;;  %v405_v61 = vmul.f32 %v1520_v40, %v401_v58 }
 0x1b0   :  { %915 = vperm.xlu1 %1217, %v905_v25   ;;  %943 = vperm.xlu2 %1215, %v933_v26  }
 0x1b1   :  { %981 = vperm.xlu0 %1216, %v963_v27  }
 0x1b2   :  { %v568_v33 = vpop.permute.xlu0 %567 }
 0x1b3   :  { %v573_v45 = vmul.f32 %v1503_v28, %v568_v33 }
 0x1b8   :  { %910 = vperm.xlu1 %1217, %v904_v34   ;;  %971 = vperm.xlu2 %1215, %v961_v35  }
 0x1b9   :  { %976 = vperm.xlu0 %1216, %v962_v36  }
 0x1ba   :  { %v570_v37 = vpop.permute.xlu1 %569 }
 0x1bb   :  { %v413_v39 = vpop.permute.xlu0 %412  ;;  %v574_v43 = vmul.f32 %v1503_v28, %v570_v37 }
 0x1bc   :  { %v417_v44 = vmul.f32 %v1503_v28, %v413_v39 }
 0x1bd   :  { %611 = vmatpush.msra.mxu3 %v574_v43 }
 0x1be   :  { %454 = vmatpush.msra.mxu2 %v417_v44 }
 0x1bf   :  { %612 = vmatpush.msra.mxu3 %v573_v45 }
 0x1c0   :  { %455 = vmatpush.msra.mxu2 %v416_v47  ;;  %938 = vperm.xlu1 %1217, %v932_v46  }
 0x1c1   :  { %966 = vperm.xlu0 %1216, %v960_v48   ;;  %613 = vmatpush.msra.mxu3 %v572_v49 }
 0x1c2   :  { %456 = vmatpush.msra.mxu2 %v415_v50  ;;  %v564_v52 = vpop.permute.xlu1 %563 }
 0x1c3   :  { %v571_v55 = vmul.f32 %v1503_v28, %v564_v52  ;;  %v397_v56 = vpop.permute.xlu0 %396 }
 0x1c4   :  { %457 = vmatpush.msra.mxu2 %v414_v51 }
 0x1c5   :  { %614 = vmatpush.msra.mxu3 %v571_v55 }
 0x1c6   :  { %458 = vmatpush.msra.mxu2 %v1586_v54 }
 0x1c7   :  { %615 = vmatpush.msra.mxu3 %v1584_v53 }
 0x1c8   :  { %459 = vmatpush.msra.mxu2 %v1576_v41  ;;  %v561_v41 = vmul.f32 %v1520_v40, %v556_v38 }
 0x1c9   :  { %616 = vmatpush.msra.mxu3 %v1578_v42  ;;  %v395_v42 = vpop.permute.xlu2 %394 }
 0x1ca   :  { %460 = vmatpush.msra.mxu2 %v1570_v30  ;;  %v399_v59 = vpop.permute.xlu1 %398  ;;  %v403_v30 = vmul.f32 %v1520_v40, %v397_v56 }
 0x1cb   :  { %v558_v60 = vpop.permute.xlu0 %557  ;;  %617 = vmatpush.msra.mxu3 %v1568_v29  ;;  %v404_v53 = vmul.f32 %v1520_v40, %v399_v59  ;;  %v402_v29 = vmul.f32 %v1520_v40, %v395_v42 }
 0x1cc   :  { %461 = vmatpush.msra.mxu2 %v1564_v17  ;;  %v562_v62 = vmul.f32 %v1520_v40, %v558_v60  ;;  %v1158_v17 = vld [vmem:[%s2042_s8 + $0x20] sm:$0xff]  ;;  %s1254_s8 = smov [#allocation3]  }
 0x1cd   :  { %618 = vmatpush.msra.mxu3 %v1594_v57  ;;  %s1139_s29 = sshll.u32 %s1254_s8, 4  ;;  %s1140_s29 = int_to_ptr.vmem [resolvable:$true] %s1139_s29 }
 0x1ce   :  { %462 = vmatpush.msra.mxu2 %v405_v61 }
 0x1cf   :  { %619 = vmatpush.msra.mxu3 %v562_v62 }
 0x1d0   :  { %463 = vmatpush.msra.mxu2 %v404_v53 }
 0x1d1   :  { %620 = vmatpush.msra.mxu3 %v561_v41  ;;  %v593_v8 = vpop.permute.xlu2 %592 }
 0x1d2   :  { %464 = vmatpush.msra.mxu2 %v403_v30  ;;  %v554_v54 = vpop.permute.xlu1 %553 }
 0x1d3   :  { %v560_v57 = vmul.f32 %v1520_v40, %v554_v54  ;;  %v552_v63 = vpop.permute.xlu0 %551 }
 0x1d4   :  { %465 = vmatpush.msra.mxu2 %v402_v29  ;;  %v559_v0 = vmul.f32 %v1520_v40, %v552_v63 }
 0x1d5   :  { %1166 = vmatmul.msk.f32.vlgmr.msra.gmra.mxu2 %vm153_vm0, %v1158_v17  ;;  %621 = vmatpush.msra.mxu3 %v560_v57 }
 0x1d7   :  { %622 = vmatpush.msra.mxu3 %v559_v0 }
 0x1d8   :  { %1186 = vmatmul.msk.f32.vlgmr.msra.gmra.mxu3 %vm153_vm0, %v1178_v1 }
 0x1d9   :  { %v588_v10 = vpop.permute.xlu2 %587 }
 0x1da   :  { %v436_v9 = vpop.permute.xlu1 %435 }
 0x1db   :  { %v431_v15 = vpop.permute.xlu0 %430 }
 0x1dd   :  { %1167 = vmatmul.msk.f32.gmra.mxu2 %vm153_vm0, %v1159_v2 }
 0x1e0   :  { %1187 = vmatmul.msk.f32.gmra.mxu3 %vm153_vm0, %v1179_v3 }
 0x1e1   :  { %v497_v12 = vpop.permute.xlu2 %496 }
 0x1e2   :  { %v502_v11 = vpop.permute.xlu1 %501 }
 0x1e3   :  { %v659_v19 = vpop.permute.xlu0 %658 }
 0x1e5   :  { %1168 = vmatmul.msk.f32.gmra.mxu2 %vm153_vm0, %v1160_v4 }
 0x1e8   :  { %1188 = vmatmul.msk.f32.gmra.mxu3 %vm153_vm0, %v1180_v5 }
 0x1e9   :  { %v654_v14 = vpop.permute.xlu2 %653 }
 0x1ea   :  { %v426_v13 = vpop.permute.xlu1 %425 }
 0x1eb   :  { %v531_v22 = vpop.permute.xlu0 %530 }
 0x1ed   :  { %1169 = vmatmul.msk.f32.gmra.mxu2 %vm153_vm0, %v1161_v6 }
 0x1f0   :  { %1189 = vmatmul.msk.f32.gmra.mxu3 %vm153_vm0, %v1181_v7 }
 0x1f1   :  { %v492_v18 = vpop.permute.xlu2 %491 }
 0x1f2   :  { %v583_v16 = vpop.permute.xlu1 %582 }
 0x1f3   :  { %v688_v25 = vpop.permute.xlu0 %687 }
 0x1f9   :  { %v649_v21 = vpop.permute.xlu2 %648 }
 0x1fa   :  { %v421_v20 = vpop.permute.xlu1 %420 }
 0x1fb   :  { %v526_v35 = vpop.permute.xlu0 %525 }
 0x201   :  { %v521_v24 = vpop.permute.xlu2 %520 }
 0x202   :  { %v578_v23 = vpop.permute.xlu1 %577 }
 0x203   :  { %v683_v46 = vpop.permute.xlu0 %682 }
 0x209   :  { %v516_v34 = vpop.permute.xlu2 %515 }
 0x20a   :  { %v487_v31 = vpop.permute.xlu1 %486 }
 0x20b   :  { %v644_v59 = vpop.permute.xlu0 %643 }
 0x212   :  { %v678_v2 = vpop.permute.xlu1 %677 }
 0x213   :  { %v673_v5 = vpop.permute.xlu0 %672 }
 0x258   :  { %v467_v26 = vpop.f32.mrf.mxu2 }
 0x259   :  { %v468_v27 = vadd.f32 %v467_v26, %v421_v20  ;;  %v921_v20 = vpop.permute.xlu2 %920 }
 0x25b   :  { %v504_v32 = vmul.f32 %v487_v31, %v468_v27  ;;  %v624_v33 = vpop.f32.mrf.mxu3 }
 0x25c   :  { %v625_v41 = vadd.f32 %v624_v33, %v578_v23 }
 0x25d   :  { %v533_v36 = vadd.f32 %v516_v34, %v504_v32 }
 0x25e   :  { %v661_v63 = vmul.f32 %v644_v59, %v625_v41 }
 0x25f   :  { %v1776_v37 = vmax.f32 %v533_v36, 0.0 }
 0x260   :  { %v470_v38 = vpop.f32.mrf.mxu2  ;;  %v690_v6 = vadd.f32 %v673_v5, %v661_v63 }
 0x261   :  { %v471_v39 = vadd.f32 %v470_v38, %v426_v13  ;;  %712 = vrot.lane.b32.xlu1 %v1776_v37, %s2044_s2  ;;  %v818_v13 = vld [vmem:[%s1990_s17 + $0x8] sm:$0xff]  ;;  %v949_v23 = vpop.permute.xlu2 %948 }
 0x263   :  { %v505_v43 = vmul.f32 %v492_v18, %v471_v39  ;;  %v627_v44 = vpop.f32.mrf.mxu3  ;;  %v820_v18 = vld [vmem:[%s1990_s17 + $0x18] sm:$0xff] }
 0x264   :  { %v628_v61 = vadd.f32 %v627_v44, %v583_v16  ;;  %v816_v16 = vld [vmem:[%s1989_s16 + $0x18] sm:$0xff] }
 0x265   :  { %v534_v45 = vadd.f32 %v521_v24, %v505_v43 }
 0x266   :  { %v662_v54 = vmul.f32 %v649_v21, %v628_v61  ;;  %v954_v21 = vpop.permute.xlu0 %953 }
 0x267   :  { %v1780_v47 = vmax.f32 %v534_v45, 0.0 }
 0x268   :  { %v473_v48 = vpop.f32.mrf.mxu2  ;;  %v691_v3 = vadd.f32 %v678_v2, %v662_v54 }
 0x269   :  { %v474_v49 = vadd.f32 %v473_v48, %v431_v15  ;;  %714 = vrot.lane.b32.xlu0 %v1780_v47, %s2044_s2  ;;  %v819_v15 = vld [vmem:[%s1990_s17 + $0x10] sm:$0xff]  ;;  %v944_v26 = vpop.permute.xlu2 %943 }
 0x26b   :  { %v506_v50 = vmul.f32 %v497_v12, %v474_v49  ;;  %v630_v51 = vpop.f32.mrf.mxu3  ;;  %v814_v12 = vld [vmem:[%s1989_s16 + $0x8] sm:$0xff] }
 0x26c   :  { %v631_v56 = vadd.f32 %v630_v51, %v588_v10  ;;  %v1807_v10 = vmax.f32 %v690_v6, 0.0 }
 0x26d   :  { %v535_v52 = vadd.f32 %v526_v35, %v506_v50 }
 0x26e   :  { %v663_v42 = vmul.f32 %v654_v14, %v631_v56  ;;  %v815_v14 = vld [vmem:[%s1989_s16 + $0x10] sm:$0xff]  ;;  %v982_v24 = vpop.permute.xlu0 %981 }
 0x26f   :  { %v1784_v55 = vmax.f32 %v535_v52, 0.0 }
 0x270   :  { %v476_v58 = vpop.f32.mrf.mxu2  ;;  %v692_v0 = vadd.f32 %v683_v46, %v663_v42 }
 0x271   :  { %v477_v60 = vadd.f32 %v476_v58, %v436_v9  ;;  %716 = vrot.lane.b32.xlu2 %v1784_v55, %s2044_s2  ;;  %v1803_v9 = vmax.f32 %v691_v3, 0.0  ;;  %v972_v32 = vpop.permute.xlu2 %971 }
 0x272   :  { %v1796_v7 = vmax.f32 %v692_v0, 0.0 }
 0x273   :  { %v507_v62 = vmul.f32 %v502_v11, %v477_v60  ;;  %v633_v53 = vpop.f32.mrf.mxu3  ;;  %v817_v11 = vld [vmem:[%s1990_s17] sm:$0xff] }
 0x274   :  { %v634_v30 = vadd.f32 %v633_v53, %v593_v8  ;;  %v813_v8 = vld [vmem:[%s1989_s16] sm:$0xff]  ;;  %s2049_s16 = sld [smem:[#allocation18_spill]] }
 0x275   :  { %v536_v29 = vadd.f32 %v531_v22, %v507_v62 }
 0x276   :  { %v664_v17 = vmul.f32 %v659_v19, %v634_v30  ;;  %v926_v19 = vpop.permute.xlu1 %925  ;;  %v977_v27 = vpop.permute.xlu0 %976 }
 0x277   :  { %v1788_v57 = vmax.f32 %v536_v29, 0.0 }
 0x278   :  { %v693_v1 = vadd.f32 %v688_v25, %v664_v17 }
 0x279   :  { %718 = vrot.lane.b32.xlu1 %v1788_v57, %s2044_s2  ;;  %887 = vmatpush.msrb.mxu3 %v1788_v57 }
 0x27a   :  { %v1793_v4 = vmax.f32 %v693_v1, 0.0 }
 0x27b   :  { %888 = vmatpush.msrb.mxu3 %v1784_v55 }
 0x27c   :  { %846 = vmatpush.msrb.mxu2 %v1793_v4 }
 0x27d   :  { %889 = vmatpush.msrb.mxu3 %v1780_v47 }
 0x27e   :  { %847 = vmatpush.msrb.mxu2 %v1796_v7  ;;  %v916_v22 = vpop.permute.xlu1 %915  ;;  %v967_v34 = vpop.permute.xlu0 %966 }
 0x27f   :  { %890 = vmatpush.msrb.mxu3 %v1776_v37 }
 0x280   :  { %848 = vmatpush.msrb.mxu2 %v1803_v9  ;;  %1204 = vmatmul.msk.f32.vlgmr.msrb.gmra.mxu3 %vm821_vm1, %v813_v8 }
 0x282   :  { %849 = vmatpush.msrb.mxu2 %v1807_v10 }
 0x283   :  { %1200 = vmatmul.msk.f32.vlgmr.msrb.gmra.mxu2 %vm821_vm1, %v817_v11 }
 0x286   :  { %v911_v25 = vpop.permute.xlu1 %910 }
 0x288   :  { %1205 = vmatmul.msk.f32.gmra.mxu3 %vm821_vm1, %v814_v12  ;;  %v994_v12 = vld [vmem:[%s1995_s22] sm:$0xff] }
 0x28b   :  { %1201 = vmatmul.msk.f32.gmra.mxu2 %vm821_vm1, %v818_v13  ;;  %v1073_v13 = vld [vmem:[%s1997_s24] sm:$0xff] }
 0x28e   :  { %v939_v31 = vpop.permute.xlu1 %938 }
 0x290   :  { %1206 = vmatmul.msk.f32.gmra.mxu3 %vm821_vm1, %v815_v14  ;;  %v1074_v14 = vld [vmem:[%s1997_s24 + $0x8] sm:$0xff] }
 0x293   :  { %1202 = vmatmul.msk.f32.gmra.mxu2 %vm821_vm1, %v819_v15  ;;  %v699_v15 = vld [vmem:[%s1986_s13] sm:$0x7] }
 0x298   :  { %1207 = vmatmul.msk.f32.gmra.mxu3 %vm821_vm1, %v816_v16  ;;  %v1090_v16 = vld [vmem:[#allocation2] sm:$0x1] }
 0x29b   :  { %1203 = vmatmul.msk.f32.gmra.mxu2 %vm821_vm1, %v820_v18 }
 0x2cb   :  { %v717_v35 = vpop.permute.xlu2 %716 }
 0x2cc   :  { %v722_v43 = vmul.f32 %v1503_v28, %v717_v35 }
 0x2d3   :  { %v713_v33 = vpop.permute.xlu1 %712 }
 0x2d4   :  { %v720_v45 = vmul.f32 %v1503_v28, %v713_v33 }
 0x2db   :  { %v715_v39 = vpop.permute.xlu0 %714 }
 0x2dc   :  { %v721_v44 = vmul.f32 %v1503_v28, %v715_v39 }
 0x2eb   :  { %v719_v36 = vpop.permute.xlu1 %718 }
 0x2ec   :  { %v723_v38 = vmul.f32 %v1503_v28, %v719_v36 }
 0x2ee   :  { %736 = vmatpush.msrb.mxu0 %v723_v38  ;;  %v698_v38 = vld [vmem:[%s1985_s12] sm:$0x7] }
 0x2f0   :  { %737 = vmatpush.msrb.mxu0 %v722_v43 }
 0x2f2   :  { %738 = vmatpush.msrb.mxu0 %v721_v44 }
 0x2f4   :  { %739 = vmatpush.msrb.mxu0 %v720_v45 }
 0x2f6   :  { %740 = vmatpush.msrb.mxu0 %v1788_v57 }
 0x2f8   :  { %741 = vmatpush.msrb.mxu0 %v1784_v55 }
 0x2fa   :  { %742 = vmatpush.msrb.mxu0 %v1780_v47 }
 0x2fc   :  { %743 = vmatpush.msrb.mxu0 %v1776_v37 }
 0x303   :  { %v892_v46 = vpop.f32.mrf.mxu3 }
 0x306   :  { %v851_v48 = vpop.f32.mrf.mxu2 }
 0x307   :  { %v893_v49 = vadd.f32 %v892_v46, %v851_v48 }
 0x309   :  { %v928_v50 = vadd.f32 %v911_v25, %v893_v49 }
 0x30b   :  { %v956_v51 = vmul.f32 %v939_v31, %v928_v50  ;;  %v895_v52 = vpop.f32.mrf.mxu3 }
 0x30d   :  { %v984_v56 = vadd.f32 %v967_v34, %v956_v51 }
 0x30e   :  { %v854_v58 = vpop.f32.mrf.mxu2 }
 0x30f   :  { %v896_v59 = vadd.f32 %v895_v52, %v854_v58  ;;  %v1866_v11 = vmax.f32 %v984_v56, 0.0 }
 0x311   :  { %v929_v60 = vadd.f32 %v916_v22, %v896_v59 }
 0x313   :  { %v957_v61 = vmul.f32 %v944_v26, %v929_v60  ;;  %v898_v62 = vpop.f32.mrf.mxu3 }
 0x315   :  { %v985_v53 = vadd.f32 %v972_v32, %v957_v61 }
 0x316   :  { %v857_v41 = vpop.f32.mrf.mxu2 }
 0x317   :  { %v899_v42 = vadd.f32 %v898_v62, %v857_v41  ;;  %v1848_v30 = vmax.f32 %v985_v53, 0.0  ;;  %v992_v41 = vld [vmem:[%s2047_s5] sm:$0xff] }
 0x319   :  { %v930_v29 = vadd.f32 %v921_v20, %v899_v42  ;;  %1010 = vrot.lane.b32.xlu1 %v1848_v30, %s2044_s2 }
 0x31b   :  { %v958_v54 = vmul.f32 %v949_v23, %v930_v29  ;;  %v901_v17 = vpop.f32.mrf.mxu3 }
 0x31d   :  { %v986_v63 = vadd.f32 %v977_v27, %v958_v54 }
 0x31e   :  { %v860_v0 = vpop.f32.mrf.mxu2 }
 0x31f   :  { %v902_v1 = vadd.f32 %v901_v17, %v860_v0  ;;  %v1852_v2 = vmax.f32 %v986_v63, 0.0 }
 0x321   :  { %v931_v3 = vadd.f32 %v926_v19, %v902_v1  ;;  %704 = vrot.lane.b32.xlu1 %v1784_v55, %s2045_s7  ;;  %1012 = vrot.lane.b32.xlu0 %v1852_v2, %s2044_s2  ;;  %v753_v55 = vld [vmem:[%s1988_s15] sm:$0x3]  ;;  %s1141_s15 = sshll.u32 %s2052_s10, 4  ;;  %s1142_s15 = int_to_ptr.hbm [resolvable:$true] %s1141_s15 }
 0x323   :  { %v959_v5 = vmul.f32 %v954_v21, %v931_v3 }
 0x325   :  { %v987_v6 = vadd.f32 %v982_v24, %v959_v5 }
 0x327   :  { %v1858_v8 = vmax.f32 %v987_v6, 0.0 }
 0x329   :  { %1002 = vrot.lane.b32.xlu1 %v1858_v8, %s2045_s7  ;;  %1014 = vrot.lane.b32.xlu2 %v1858_v8, %s2044_s2 }
 0x32a   :  { %706 = vrot.lane.b32.xlu0 %v1788_v57, %s2045_s7  ;;  %v1060_v57 = vld [vmem:[%s1996_s23 + $0x8] sm:$0xff] }
 0x331   :  { %996 = vrot.lane.b32.xlu1 %v1866_v11, %s2045_s7  ;;  %1008 = vrot.lane.b32.xlu2 %v1866_v11, %s2044_s2 }
 0x332   :  { %700 = vrot.lane.b32.xlu0 %v1776_v37, %s2045_s7  ;;  %v995_v37 = vld [vmem:[%s1995_s22 + $0x8] sm:$0xff] }
 0x339   :  { %768 = vrot.lane.b32.xlu1 %v1803_v9, %s2044_s2  ;;  %702 = vrot.lane.b32.xlu2 %v1780_v47, %s2045_s7  ;;  %v1059_v47 = vld [vmem:[%s1996_s23] sm:$0xff] }
 0x33a   :  { %998 = vrot.lane.b32.xlu0 %v1848_v30, %s2045_s7 }
 0x341   :  { %758 = vrot.lane.b32.xlu1 %v1796_v7, %s2045_s7  ;;  %1000 = vrot.lane.b32.xlu2 %v1852_v2, %s2045_s7 }
 0x342   :  { %770 = vrot.lane.b32.xlu0 %v1796_v7, %s2044_s2 }
 0x349   :  { %1027 = vperm.xlu1 %1217, %v995_v37   ;;  %772 = vrot.lane.b32.xlu2 %v1793_v4, %s2044_s2 }
 0x34a   :  { %760 = vrot.lane.b32.xlu0 %v1793_v4, %s2045_s7 }
 0x351   :  { %1063 = vperm.xlu1 %1217, %v1059_v47   ;;  %766 = vrot.lane.b32.xlu2 %v1807_v10, %s2044_s2 }
 0x352   :  { %754 = vrot.lane.b32.xlu0 %v1807_v10, %s2045_s7 }
 0x359   :  { %780 = vperm.xlu1 %1217, %v753_v55   ;;  %756 = vrot.lane.b32.xlu2 %v1803_v9, %s2045_s7  ;;  %s2046_s7 = sld [smem:[#allocation8_spill]] }
 0x35a   :  { %1068 = vperm.xlu0 %1216, %v1060_v57  }
 0x35f   :  { %v1223_v51 = vld [vmem:[%s2046_s7] ss:$0 sm:$0xff] }
 0x361   :  { %1022 = vperm.xlu2 %1215, %v994_v12  }
 0x362   :  { %1077 = vperm.xlu0 %1216, %v1073_v13  }
 0x369   :  { %1082 = vperm.xlu2 %1215, %v1074_v14  }
 0x36a   :  { %726 = vperm.xlu0 %1216, %v699_v15  }
 0x371   :  { %1093 = vperm.xlu2 %1215, %v1090_v16   ;;  %v1089_v16 = vld [vmem:[%s2050_s3] sm:$0x1] }
 0x383   :  { %v1015_v18 = vpop.permute.xlu2 %1014 }
 0x384   :  { %v1019_v39 = vmul.f32 %v1503_v28, %v1015_v18 }
 0x38b   :  { %v1009_v19 = vpop.permute.xlu2 %1008  ;;  %v1011_v20 = vpop.permute.xlu1 %1010 }
 0x38c   :  { %v1017_v45 = vmul.f32 %v1503_v28, %v1011_v20  ;;  %v1016_v48 = vmul.f32 %v1503_v28, %v1009_v19 }
 0x393   :  { %v703_v21 = vpop.permute.xlu2 %702  ;;  %v1013_v22 = vpop.permute.xlu0 %1012 }
 0x394   :  { %v705_v23 = vpop.permute.xlu1 %704  ;;  %v709_v32 = vmul.f32 %v1520_v40, %v703_v21  ;;  %v1018_v43 = vmul.f32 %v1503_v28, %v1013_v22  ;;  %v1220_v21 = vld [vmem:[%s2051_s18] ss:$0 sm:$0xff] }
 0x395   :  { %v710_v27 = vmul.f32 %v1520_v40, %v705_v23 }
 0x39b   :  { %v1001_v24 = vpop.permute.xlu2 %1000 }
 0x39c   :  { %v707_v25 = vpop.permute.xlu0 %706  ;;  %v1003_v31 = vpop.permute.xlu1 %1002 }
 0x39d   :  { %v711_v26 = vmul.f32 %v1520_v40, %v707_v25  ;;  %v1007_v58 = vmul.f32 %v1520_v40, %v1003_v31 }
 0x39f   :  { %744 = vmatpush.msrb.mxu0 %v711_v26 }
 0x3a1   :  { %745 = vmatpush.msrb.mxu0 %v710_v27 }
 0x3a3   :  { %746 = vmatpush.msrb.mxu0 %v709_v32  ;;  %v773_v33 = vpop.permute.xlu2 %772 }
 0x3a4   :  { %v777_v34 = vmul.f32 %v1503_v28, %v773_v33  ;;  %v701_v35 = vpop.permute.xlu0 %700  ;;  %v997_v44 = vpop.permute.xlu1 %996  ;;  %v1006_v28 = vmul.f32 %v1520_v40, %v1001_v24 }
 0x3a5   :  { %v708_v36 = vmul.f32 %v1520_v40, %v701_v35  ;;  %v1004_v53 = vmul.f32 %v1520_v40, %v997_v44 }
 0x3a6   :  { %790 = vmatpush.msrb.mxu1 %v777_v34 }
 0x3a7   :  { %747 = vmatpush.msrb.mxu0 %v708_v36 }
 0x3a8   :  { %1198 = vmatmul.msk.f32.vlgmr.msrb.gmra.mxu0 %vm153_vm0, %v698_v38 }
 0x3a9   :  { %1040 = vmatpush.msra.mxu0 %v1019_v39 }
 0x3ab   :  { %1041 = vmatpush.msra.mxu0 %v1018_v43  ;;  %v767_v56 = vpop.permute.xlu2 %766 }
 0x3ac   :  { %v999_v46 = vpop.permute.xlu0 %998  ;;  %v769_v49 = vpop.permute.xlu1 %768  ;;  %v774_v60 = vmul.f32 %v1223_v51, %v767_v56 }
 0x3ad   :  { %1042 = vmatpush.msra.mxu0 %v1017_v45  ;;  %v775_v59 = vmul.f32 %v1223_v51, %v769_v49  ;;  %v1005_v61 = vmul.f32 %v1520_v40, %v999_v46 }
 0x3af   :  { %1043 = vmatpush.msra.mxu0 %v1016_v48 }
 0x3b1   :  { %1044 = vmatpush.msra.mxu0 %v1858_v8 }
 0x3b3   :  { %1045 = vmatpush.msra.mxu0 %v1852_v2  ;;  %v757_v29 = vpop.permute.xlu2 %756 }
 0x3b4   :  { %v771_v50 = vpop.permute.xlu0 %770  ;;  %v759_v42 = vpop.permute.xlu1 %758 }
 0x3b5   :  { %1046 = vmatpush.msra.mxu0 %v1848_v30  ;;  %v776_v52 = vmul.f32 %v1223_v51, %v771_v50 }
 0x3b7   :  { %1047 = vmatpush.msra.mxu0 %v1866_v11  ;;  %791 = vmatpush.msrb.mxu1 %v776_v52 }
 0x3b9   :  { %1048 = vmatpush.msra.mxu0 %v1007_v58  ;;  %792 = vmatpush.msrb.mxu1 %v775_v59 }
 0x3bb   :  { %1049 = vmatpush.msra.mxu0 %v1006_v28  ;;  %793 = vmatpush.msrb.mxu1 %v774_v60  ;;  %v1023_v2 = vpop.permute.xlu2 %1022 }
 0x3bc   :  { %v761_v62 = vpop.permute.xlu0 %760  ;;  %v1028_v0 = vpop.permute.xlu1 %1027 }
 0x3bd   :  { %1050 = vmatpush.msra.mxu0 %v1005_v61  ;;  %794 = vmatpush.msrb.mxu1 %v1793_v4  ;;  %v765_v30 = vmul.f32 %v1520_v40, %v761_v62  ;;  %v1224_v4 = vld [vmem:[%s2048_s30] ss:$0 sm:$0xff] }
 0x3be   :  { %v764_v54 = vmul.f32 %v1224_v4, %v759_v42  ;;  %v763_v63 = vmul.f32 %v1224_v4, %v757_v29  ;;  %v752_v40 = vld [vmem:[%s2049_s16] sm:$0x3] }
 0x3bf   :  { %1051 = vmatpush.msra.mxu0 %v1004_v53  ;;  %795 = vmatpush.msrb.mxu1 %v1796_v7  ;;  %v993_v7 = vld [vmem:[%s2047_s5 + $0x8] sm:$0xff] }
 0x3c0   :  { %1208 = vmatmul.msk.f32.vlgmr.msra.gmra.mxu0 %vm153_vm0, %v992_v41 }
 0x3c1   :  { %796 = vmatpush.msrb.mxu1 %v1803_v9 }
 0x3c3   :  { %797 = vmatpush.msrb.mxu1 %v1807_v10  ;;  %v1083_v55 = vpop.permute.xlu2 %1082 }
 0x3c4   :  { %v755_v17 = vpop.permute.xlu0 %754  ;;  %v1064_v6 = vpop.permute.xlu1 %1063 }
 0x3c5   :  { %798 = vmatpush.msrb.mxu1 %v765_v30  ;;  %v762_v9 = vmul.f32 %v1224_v4, %v755_v17 }
 0x3c7   :  { %799 = vmatpush.msrb.mxu1 %v764_v54 }
 0x3c8   :  { %1209 = vmatmul.msk.f32.gmra.mxu0 %vm153_vm0, %v993_v7 }
 0x3c9   :  { %800 = vmatpush.msrb.mxu1 %v763_v63 }
 0x3cb   :  { %801 = vmatpush.msrb.mxu1 %v762_v9  ;;  %v1094_v24 = vpop.permute.xlu2 %1093 }
 0x3cc   :  { %1199 = vmatmul.msk.f32.vlgmr.msrb.gmra.mxu1 %vm153_vm0, %v752_v40  ;;  %v1069_v3 = vpop.permute.xlu0 %1068  ;;  %v781_v19 = vpop.permute.xlu1 %780  ;;  %v1096_v26 = vperm.slane %v1094_v24, 0 }
 0x3d4   :  { %v1078_v57 = vpop.permute.xlu0 %1077 }
 0x3dc   :  { %v727_v32 = vpop.permute.xlu0 %726 }
 0x425   :  { %v749_v10 = vpop.f32.mrf.mxu0 }
 0x426   :  { %v750_v34 = vadd.f32 %v749_v10, %v727_v32 }
 0x43d   :  { %v1053_v1 = vpop.f32.mrf.mxu0 }
 0x43e   :  { %v1054_v5 = vadd.f32 %v1053_v1, %v1023_v2 }
 0x440   :  { %v1071_v11 = vmul.f32 %v1064_v6, %v1054_v5 }
 0x442   :  { %v1085_v13 = vadd.f32 %v1078_v57, %v1071_v11 }
 0x444   :  { %v1087_v15 = vmax.f32 %v1085_v13, 0.0 }
 0x445   :  { %v1056_v8 = vpop.f32.mrf.mxu0 }
 0x446   :  { %v1057_v37 = vadd.f32 %v1056_v8, %v1028_v0 }
 0x448   :  { %v1072_v47 = vmul.f32 %v1069_v3, %v1057_v37 }
 0x449   :  { %v803_v18 = vpop.f32.mrf.mxu1 }
 0x44a   :  { %v1086_v12 = vadd.f32 %v1083_v55, %v1072_v47  ;;  %v804_v20 = vadd.f32 %v803_v18, %v781_v19 }
 0x44c   :  { %v1088_v14 = vmax.f32 %v1086_v12, 0.0  ;;  %v810_v22 = vmul.f32 %v1220_v21, %v804_v20 }
 0x44e   :  { %1115 = vmatpush.msra.mxu1 %v1088_v14  ;;  %v811_v23 = vmul.f32 1.442695, %v810_v22 }
 0x450   :  { %1116 = vmatpush.msra.mxu1 %v1087_v15  ;;  %1221 = vpow2.f32 %v811_v23 }
 0x451   :  { %1210 = vmatmul.msk.f32.vlgmr.msra.gmra.mxu1 %vm1097_vm2, %v1089_v16 }
 0x456   :  { %v1222_v25 = vpop.eup %1221 }
 0x457   :  { %v1122_v27 = vrot.slane %v1222_v25, 5 }
 0x459   :  { %v1128_v36 = vsel %vm1127_vm3, %v750_v34, %v1122_v27 }
 0x4ce   :  { %v1118_v31 = vpop.f32.mrf.mxu1 }
 0x4cf   :  { %v1119_v33 = vadd.f32 %v1118_v31, %v1096_v26 }
 0x4d1   :  { %v1125_v35 = vrot.slane %v1119_v33, 3 }
 0x4d3   :  { %v1130_v38 = vsel %vm1129_vm4, %v1128_v36, %v1125_v35 }
 0x4d4   :  { %v1132_v39 = vsel %vm1131_vm5, %v1130_v38, 0.0 }
 0x4d5   :  { %1133 = vst [vmem:[#allocation3] sm:$0xff] %v1132_v39 }
 0x4d6   :  { %1144 = dma.vmem_to_hbm [thread:$0]  %s1140_s29, 128, %s1142_s15, [#allocation4]  }
 0x4d7   :  { %1249 = dma.done.wait [#allocation4], 128  }
 0x4d8   :  { %1250 = vsyncadd [#allocation4], 4294967168 }
 0x4d9   :  { %1149 = vsyncpa [#allocation4], 1 }

</bundles_post_ra>
